<compile_context>
chip_gen: v7x
topology: tpu7x:2x2x1
jax: 0.10.0
libtpu: 0.0.40
codegen_flags: <defaults>
</compile_context>

<pallas_src>
import functools
import math

import jax
import jax.numpy as jnp
from jax.experimental import pallas as pl
from jax.experimental.pallas import tpu as pltpu


CFG = dict(
    vocab_size=100,
    hidden=32,
    heads=2,
    layers=2,
    intermediate=64,
    max_pos=64,
    type_vocab=2,
    num_classes=3,
    seq=8,            # stands in for the 142 tokens of the original module
)

NPAD = 128            # lane-dense padded width for the classifier output


# ----------------------------------------------------------------------------
# Single fused Pallas kernel: whole encoder forward for one batch element
# ----------------------------------------------------------------------------

def _fused_forward_kernel(
    x_ref, bias_ref, eg_ref, eb_ref,
    qkvw_ref, qkvb_ref, aow_ref, aob_ref,
    ln1g_ref, ln1b_ref, ff1w_ref, ff1b_ref,
    ff2w_ref, ff2b_ref, ln2g_ref, ln2b_ref,
    fcw_ref, fcb_ref,
    o_ref,
    *, layers, heads, head_dim, eps):
  H = heads * head_dim
  scale = 1.0 / math.sqrt(head_dim)

  def mm(a, w):
    # bf16 MXU matmul, f32 accumulation.
    return jnp.dot(a.astype(jnp.bfloat16), w.astype(jnp.bfloat16),
                   preferred_element_type=jnp.float32)

  def mm_t(a, b):
    # a (M, D) · b (N, D) contracting the last dim of both (no transpose op).
    return jax.lax.dot_general(
        a.astype(jnp.bfloat16), b.astype(jnp.bfloat16),
        (((1,), (1,)), ((), ())),
        preferred_element_type=jnp.float32)

  def layer_norm(v, g, b):
    mu = jnp.mean(v, axis=-1, keepdims=True)
    var = jnp.mean((v - mu) * (v - mu), axis=-1, keepdims=True)
    return (v - mu) * jax.lax.rsqrt(var + eps) * g + b

  x = x_ref[0]                     # (S, H) f32: word+pos+type embeddings
  bias = bias_ref[0]               # (1, S) additive key mask (-10000 on pads)

  # embedding LayerNorm
  x = layer_norm(x, eg_ref[...], eb_ref[...])

  for l in range(layers):
    # ---- self-attention: fused QKV projection, per-head softmax attention --
    qkv = mm(x, qkvw_ref[l]) + qkvb_ref[l]            # (S, 3H)
    w_o = aow_ref[l]                                   # (H, H)
    attn_out = None
    for h in range(heads):
      q = qkv[:, h * head_dim:(h + 1) * head_dim]              # (S, D)
      k = qkv[:, H + h * head_dim:H + (h + 1) * head_dim]      # (S, D)
      v = qkv[:, 2 * H + h * head_dim:2 * H + (h + 1) * head_dim]
      s = mm_t(q, k) * scale + bias                            # (S, S)
      s = s - jnp.max(s, axis=-1, keepdims=True)               # stable softmax
      p = jnp.exp(s)
      p = p * pl.reciprocal(jnp.sum(p, axis=-1, keepdims=True), approx=True)
      ctx_h = mm(p, v)                                         # (S, D)
      # fold the head merge into the output projection:
      #   concat_h(ctx_h) @ W_o == sum_h ctx_h @ W_o[h*D:(h+1)*D, :]
      part = mm(ctx_h, w_o[h * head_dim:(h + 1) * head_dim, :])
      attn_out = part if attn_out is None else attn_out + part
    attn_out = attn_out + aob_ref[l]                           # (S, H)

    # residual + LayerNorm epilogue
    x = layer_norm(attn_out + x, ln1g_ref[l], ln1b_ref[l])

    # ---- feed-forward -----------------------------------------------------
    ff = mm(x, ff1w_ref[l]) + ff1b_ref[l]                      # (S, I)
    ff = jax.nn.gelu(ff, approximate=True)                     # tanh GELU (EUP)
    ff = mm(ff, ff2w_ref[l]) + ff2b_ref[l]                     # (S, H)
    x = layer_norm(ff + x, ln2g_ref[l], ln2b_ref[l])

  # ---- classifier on the flattened hidden state ---------------------------
  #   flatten(x) @ fc_w == sum_s x[s, :] @ fc_w[s*H:(s+1)*H, :]
  logits = fcb_ref[...]                                        # (1, NPAD)
  for s in range(x.shape[0]):
    logits = logits + mm(x[s:s + 1, :], fcw_ref[s])
  o_ref[0] = logits


# ----------------------------------------------------------------------------
# Parameters (tiny deterministic "BERT") and the JAX-level forward wrapper
# ----------------------------------------------------------------------------

def init_params(key, cfg):
  H, I, L = cfg["hidden"], cfg["intermediate"], cfg["layers"]
  S, C = cfg["seq"], cfg["num_classes"]

  def rnd(k, shape, scale=0.02):
    return scale * jax.random.normal(k, shape, dtype=jnp.float32)

  ks = iter(jax.random.split(key, 16))
  return {
      "word_emb": rnd(next(ks), (cfg["vocab_size"], H)),
      "pos_emb": rnd(next(ks), (cfg["max_pos"], H)),
      "type_emb": rnd(next(ks), (cfg["type_vocab"], H)),
      "emb_ln_g": jnp.ones((H,), jnp.float32),
      "emb_ln_b": jnp.zeros((H,), jnp.float32),
      # fused QKV weights: columns are [Q | K | V], each H wide
      "qkv_w": rnd(next(ks), (L, H, 3 * H)),
      "qkv_b": jnp.zeros((L, 3 * H), jnp.float32),
      "ao_w": rnd(next(ks), (L, H, H)),
      "ao_b": jnp.zeros((L, H), jnp.float32),
      "ln1_g": jnp.ones((L, H), jnp.float32),
      "ln1_b": jnp.zeros((L, H), jnp.float32),
      "ff1_w": rnd(next(ks), (L, H, I)),
      "ff1_b": jnp.zeros((L, I), jnp.float32),
      "ff2_w": rnd(next(ks), (L, I, H)),
      "ff2_b": jnp.zeros((L, H), jnp.float32),
      "ln2_g": jnp.ones((L, H), jnp.float32),
      "ln2_b": jnp.zeros((L, H), jnp.float32),
      "fc_w": rnd(next(ks), (S * H, C)),
      "fc_b": jnp.zeros((C,), jnp.float32),
  }


def text_only_sentiment_forward(params, images, input_ids, attention_mask, cfg):
  # images is accepted but unused (text-only model), matching the PyTorch forward.
  del images
  B = input_ids.shape[0]
  S, H = cfg["seq"], cfg["hidden"]
  heads, L, I = cfg["heads"], cfg["layers"], cfg["intermediate"]
  D = H // heads
  C = cfg["num_classes"]

  # texts.input_ids.squeeze(1) / attention_mask.squeeze(1)
  input_ids = jnp.squeeze(input_ids, axis=1)            # (B, S) int32
  attention_mask = jnp.squeeze(attention_mask, axis=1)  # (B, S) int32

  # --- embeddings: gather + add is glue; LayerNorm happens inside the kernel.
  # TODO(synk): token-embedding gather kept as a single JAX jnp.take (one tiny
  # XLA gather over a 12.8 KB table); not worth an in-kernel DMA gather here.
  we = jnp.take(params["word_emb"], input_ids, axis=0)          # (B, S, H)
  pe = params["pos_emb"][:S][None, :, :]                        # (1, S, H)
  te = params["type_emb"][0][None, None, :]                     # (1, 1, H)
  x_emb = (we + pe + te).astype(jnp.float32)                    # (B, S, H)

  # additive attention-mask key bias (HF BERT convention)
  bias = ((1.0 - attention_mask.astype(jnp.float32)) * -10000.0)[:, None, :]

  # classifier weights, zero-padded to a lane-dense 128-wide output and
  # reshaped so fc_w3[s, h, n] == fc_w[s*H + h, n]
  fc_w = jnp.zeros((S * H, NPAD), jnp.float32).at[:, :C].set(params["fc_w"])
  fc_w = fc_w.reshape(S, H, NPAD)
  fc_b = jnp.zeros((1, NPAD), jnp.float32).at[0, :C].set(params["fc_b"])

  args = (
      x_emb,                                                # (B, S, H)
      bias,                                                 # (B, 1, S)
      params["emb_ln_g"].reshape(1, H), params["emb_ln_b"].reshape(1, H),
      params["qkv_w"], params["qkv_b"].reshape(L, 1, 3 * H),
      params["ao_w"], params["ao_b"].reshape(L, 1, H),
      params["ln1_g"].reshape(L, 1, H), params["ln1_b"].reshape(L, 1, H),
      params["ff1_w"], params["ff1_b"].reshape(L, 1, I),
      params["ff2_w"], params["ff2_b"].reshape(L, 1, H),
      params["ln2_g"].reshape(L, 1, H), params["ln2_b"].reshape(L, 1, H),
      fc_w, fc_b,
  )

  def full_block(a):
    # whole (tiny) array resident in VMEM, same block every grid step
    return pl.BlockSpec(a.shape, lambda b, n=a.ndim: (0,) * n)

  in_specs = [
      pl.BlockSpec((1, S, H), lambda b: (b, 0, 0)),   # per-batch activations
      pl.BlockSpec((1, 1, S), lambda b: (b, 0, 0)),   # per-batch mask bias
  ] + [full_block(a) for a in args[2:]]

  kernel = functools.partial(
      _fused_forward_kernel, layers=L, heads=heads, head_dim=D, eps=1e-12)

  out = pl.pallas_call(
      kernel,
      out_shape=jax.ShapeDtypeStruct((B, 1, NPAD), jnp.float32),
      grid=(B,),
      in_specs=in_specs,
      out_specs=pl.BlockSpec((1, 1, NPAD), lambda b: (b, 0, 0)),
      compiler_params=pltpu.CompilerParams(
          dimension_semantics=("parallel",)),
  )(*args)

  return out[:, 0, :C]                                   # (B, num_classes)


if __name__ == "__main__":
  cfg = CFG
  key = jax.random.PRNGKey(0)
  pkey, ikey, mkey, imkey = jax.random.split(key, 4)

  params = init_params(pkey, cfg)

  B, S = 2, cfg["seq"]
  images = jax.random.normal(imkey, (B, 3, 16, 16), dtype=jnp.float32)  # unused
  input_ids = jax.random.randint(
      ikey, (B, 1, S), 0, cfg["vocab_size"], dtype=jnp.int32)
  # mask: first few tokens valid, rest padded (deterministic pattern)
  attention_mask = (jnp.arange(S)[None, None, :]
                    < jnp.array([[6], [8]])[..., None]).astype(jnp.int32)

  fwd = jax.jit(functools.partial(text_only_sentiment_forward, cfg=cfg))
  out = fwd(params, images, input_ids, attention_mask)
  out = jax.block_until_ready(out)

  assert out.shape == (B, cfg["num_classes"])
  assert bool(jnp.all(jnp.isfinite(out)))
  print("KERNEL_OK")
</pallas_src>

<mosaic_0001>
module attributes {stable_mosaic.version = 11 : i64} {
  func.func @_fused_forward_kernel(%arg0: i32, %arg1: memref<1x8x32xf32, #tpu.memory_space<vmem>>, %arg2: memref<1x1x8xf32, #tpu.memory_space<vmem>>, %arg3: memref<1x32xf32, #tpu.memory_space<vmem>>, %arg4: memref<1x32xf32, #tpu.memory_space<vmem>>, %arg5: memref<2x32x96xf32, #tpu.memory_space<vmem>>, %arg6: memref<2x1x96xf32, #tpu.memory_space<vmem>>, %arg7: memref<2x32x32xf32, #tpu.memory_space<vmem>>, %arg8: memref<2x1x32xf32, #tpu.memory_space<vmem>>, %arg9: memref<2x1x32xf32, #tpu.memory_space<vmem>>, %arg10: memref<2x1x32xf32, #tpu.memory_space<vmem>>, %arg11: memref<2x32x64xf32, #tpu.memory_space<vmem>>, %arg12: memref<2x1x64xf32, #tpu.memory_space<vmem>>, %arg13: memref<2x64x32xf32, #tpu.memory_space<vmem>>, %arg14: memref<2x1x32xf32, #tpu.memory_space<vmem>>, %arg15: memref<2x1x32xf32, #tpu.memory_space<vmem>>, %arg16: memref<2x1x32xf32, #tpu.memory_space<vmem>>, %arg17: memref<8x32x128xf32, #tpu.memory_space<vmem>>, %arg18: memref<1x128xf32, #tpu.memory_space<vmem>>, %arg19: memref<1x1x128xf32, #tpu.memory_space<vmem>>) attributes {dimension_semantics = [#tpu.dimension_semantics<parallel>], iteration_bounds = array<i64: 2>, scalar_prefetch = 0 : i64, scratch_operands = 0 : i64, tpu.core_type = #tpu.core_type<tc>, window_params = [{transform_indices = @transform_0, window_bounds = array<i64: 1, 8, 32>}, {transform_indices = @transform_1, window_bounds = array<i64: 1, 1, 8>}, {pipeline_mode = #tpu.pipeline_mode<synchronous>, transform_indices = @transform_2, window_bounds = array<i64: 1, 32>}, {pipeline_mode = #tpu.pipeline_mode<synchronous>, transform_indices = @transform_3, window_bounds = array<i64: 1, 32>}, {pipeline_mode = #tpu.pipeline_mode<synchronous>, transform_indices = @transform_4, window_bounds = array<i64: 2, 32, 96>}, {pipeline_mode = #tpu.pipeline_mode<synchronous>, transform_indices = @transform_5, window_bounds = array<i64: 2, 1, 96>}, {pipeline_mode = #tpu.pipeline_mode<synchronous>, transform_indices = @transform_6, window_bounds = array<i64: 2, 32, 32>}, {pipeline_mode = #tpu.pipeline_mode<synchronous>, transform_indices = @transform_7, window_bounds = array<i64: 2, 1, 32>}, {pipeline_mode = #tpu.pipeline_mode<synchronous>, transform_indices = @transform_8, window_bounds = array<i64: 2, 1, 32>}, {pipeline_mode = #tpu.pipeline_mode<synchronous>, transform_indices = @transform_9, window_bounds = array<i64: 2, 1, 32>}, {pipeline_mode = #tpu.pipeline_mode<synchronous>, transform_indices = @transform_10, window_bounds = array<i64: 2, 32, 64>}, {pipeline_mode = #tpu.pipeline_mode<synchronous>, transform_indices = @transform_11, window_bounds = array<i64: 2, 1, 64>}, {pipeline_mode = #tpu.pipeline_mode<synchronous>, transform_indices = @transform_12, window_bounds = array<i64: 2, 64, 32>}, {pipeline_mode = #tpu.pipeline_mode<synchronous>, transform_indices = @transform_13, window_bounds = array<i64: 2, 1, 32>}, {pipeline_mode = #tpu.pipeline_mode<synchronous>, transform_indices = @transform_14, window_bounds = array<i64: 2, 1, 32>}, {pipeline_mode = #tpu.pipeline_mode<synchronous>, transform_indices = @transform_15, window_bounds = array<i64: 2, 1, 32>}, {pipeline_mode = #tpu.pipeline_mode<synchronous>, transform_indices = @transform_16, window_bounds = array<i64: 8, 32, 128>}, {pipeline_mode = #tpu.pipeline_mode<synchronous>, transform_indices = @transform_17, window_bounds = array<i64: 1, 128>}, {transform_indices = @transform_18, window_bounds = array<i64: 1, 1, 128>}]} {
    %c0 = arith.constant 0 : index
    %c0_0 = arith.constant 0 : index
    %c0_1 = arith.constant 0 : index
    %0 = vector.load %arg1[%c0, %c0_0, %c0_1] : memref<1x8x32xf32, #tpu.memory_space<vmem>>, vector<1x8x32xf32>
    %1 = vector.shape_cast %0 : vector<1x8x32xf32> to vector<8x32xf32>
    %c0_2 = arith.constant 0 : index
    %c0_3 = arith.constant 0 : index
    %c0_4 = arith.constant 0 : index
    %2 = vector.load %arg2[%c0_2, %c0_3, %c0_4] : memref<1x1x8xf32, #tpu.memory_space<vmem>>, vector<1x1x8xf32>
    %3 = vector.shape_cast %2 : vector<1x1x8xf32> to vector<1x8xf32>
    %c0_5 = arith.constant 0 : index
    %c0_6 = arith.constant 0 : index
    %4 = vector.load %arg3[%c0_5, %c0_6] : memref<1x32xf32, #tpu.memory_space<vmem>>, vector<1x32xf32>
    %c0_7 = arith.constant 0 : index
    %c0_8 = arith.constant 0 : index
    %5 = vector.load %arg4[%c0_7, %c0_8] : memref<1x32xf32, #tpu.memory_space<vmem>>, vector<1x32xf32>
    %cst = arith.constant dense<0.000000e+00> : vector<8xf32>
    %6 = vector.multi_reduction <add>, %1, %cst [1] : vector<8x32xf32> to vector<8xf32>
    %7 = vector.shape_cast %6 : vector<8xf32> to vector<8x1xf32>
    %cst_9 = arith.constant 3.200000e+01 : f32
    %8 = vector.broadcast %cst_9 : f32 to vector<8x1xf32>
    %9 = arith.divf %7, %8 : vector<8x1xf32>
    %10 = vector.broadcast %9 : vector<8x1xf32> to vector<8x32xf32>
    %11 = arith.subf %1, %10 : vector<8x32xf32>
    %12 = vector.broadcast %9 : vector<8x1xf32> to vector<8x32xf32>
    %13 = arith.subf %1, %12 : vector<8x32xf32>
    %14 = arith.mulf %11, %13 : vector<8x32xf32>
    %cst_10 = arith.constant dense<0.000000e+00> : vector<8xf32>
    %15 = vector.multi_reduction <add>, %14, %cst_10 [1] : vector<8x32xf32> to vector<8xf32>
    %16 = vector.shape_cast %15 : vector<8xf32> to vector<8x1xf32>
    %cst_11 = arith.constant 3.200000e+01 : f32
    %17 = vector.broadcast %cst_11 : f32 to vector<8x1xf32>
    %18 = arith.divf %16, %17 : vector<8x1xf32>
    %19 = vector.broadcast %9 : vector<8x1xf32> to vector<8x32xf32>
    %20 = arith.subf %1, %19 : vector<8x32xf32>
    %cst_12 = arith.constant 9.99999996E-13 : f32
    %21 = vector.broadcast %cst_12 : f32 to vector<8x1xf32>
    %22 = arith.addf %18, %21 : vector<8x1xf32>
    %23 = math.rsqrt %22 : vector<8x1xf32>
    %24 = vector.broadcast %23 : vector<8x1xf32> to vector<8x32xf32>
    %25 = arith.mulf %20, %24 : vector<8x32xf32>
    %26 = vector.broadcast %4 : vector<1x32xf32> to vector<8x32xf32>
    %27 = arith.mulf %25, %26 : vector<8x32xf32>
    %28 = vector.broadcast %5 : vector<1x32xf32> to vector<8x32xf32>
    %29 = arith.addf %27, %28 : vector<8x32xf32>
    %c0_13 = arith.constant 0 : index
    %c0_14 = arith.constant 0 : index
    %c0_15 = arith.constant 0 : index
    %30 = vector.load %arg5[%c0_13, %c0_14, %c0_15] : memref<2x32x96xf32, #tpu.memory_space<vmem>>, vector<1x32x96xf32>
    %31 = vector.shape_cast %30 : vector<1x32x96xf32> to vector<32x96xf32>
    %32 = arith.truncf %29 : vector<8x32xf32> to vector<8x32xbf16>
    %33 = arith.truncf %31 : vector<32x96xf32> to vector<32x96xbf16>
    %cst_16 = arith.constant dense<0.000000e+00> : vector<8x96xf32>
    %34 = tpu.matmul %32, %33, %cst_16 {dimension_numbers = #tpu.dot_dimension_numbers<[1], [0], [0], [1], [0, 0, 1, 1], [], []>} : vector<8x32xbf16>, vector<32x96xbf16>, vector<8x96xf32> -> vector<8x96xf32>
    %c0_17 = arith.constant 0 : index
    %c0_18 = arith.constant 0 : index
    %c0_19 = arith.constant 0 : index
    %35 = vector.load %arg6[%c0_17, %c0_18, %c0_19] : memref<2x1x96xf32, #tpu.memory_space<vmem>>, vector<1x1x96xf32>
    %36 = vector.shape_cast %35 : vector<1x1x96xf32> to vector<1x96xf32>
    %37 = vector.broadcast %36 : vector<1x96xf32> to vector<8x96xf32>
    %38 = arith.addf %34, %37 : vector<8x96xf32>
    %c0_20 = arith.constant 0 : index
    %c0_21 = arith.constant 0 : index
    %c0_22 = arith.constant 0 : index
    %39 = vector.load %arg7[%c0_20, %c0_21, %c0_22] : memref<2x32x32xf32, #tpu.memory_space<vmem>>, vector<1x32x32xf32>
    %40 = vector.shape_cast %39 : vector<1x32x32xf32> to vector<32x32xf32>
    %41 = vector.extract_strided_slice %38 {offsets = [0, 0], sizes = [8, 16], strides = [1, 1]} : vector<8x96xf32> to vector<8x16xf32>
    %42 = vector.extract_strided_slice %38 {offsets = [0, 32], sizes = [8, 16], strides = [1, 1]} : vector<8x96xf32> to vector<8x16xf32>
    %43 = vector.extract_strided_slice %38 {offsets = [0, 64], sizes = [8, 16], strides = [1, 1]} : vector<8x96xf32> to vector<8x16xf32>
    %44 = arith.truncf %41 : vector<8x16xf32> to vector<8x16xbf16>
    %45 = arith.truncf %42 : vector<8x16xf32> to vector<8x16xbf16>
    %cst_23 = arith.constant dense<0.000000e+00> : vector<8x8xf32>
    %46 = tpu.matmul %44, %45, %cst_23 {dimension_numbers = #tpu.dot_dimension_numbers<[1], [1], [0], [0], [0, 0, 1, 0], [], []>} : vector<8x16xbf16>, vector<8x16xbf16>, vector<8x8xf32> -> vector<8x8xf32>
    %cst_24 = arith.constant 2.500000e-01 : f32
    %47 = vector.broadcast %cst_24 : f32 to vector<8x8xf32>
    %48 = arith.mulf %46, %47 : vector<8x8xf32>
    %49 = vector.broadcast %3 : vector<1x8xf32> to vector<8x8xf32>
    %50 = arith.addf %48, %49 : vector<8x8xf32>
    %cst_25 = arith.constant dense<0xFF800000> : vector<8xf32>
    %51 = vector.multi_reduction <maximumf>, %50, %cst_25 [1] : vector<8x8xf32> to vector<8xf32>
    %52 = vector.shape_cast %51 : vector<8xf32> to vector<8x1xf32>
    %53 = vector.broadcast %52 : vector<8x1xf32> to vector<8x8xf32>
    %54 = arith.subf %50, %53 : vector<8x8xf32>
    %55 = math.exp %54 : vector<8x8xf32>
    %cst_26 = arith.constant dense<0.000000e+00> : vector<8xf32>
    %56 = vector.multi_reduction <add>, %55, %cst_26 [1] : vector<8x8xf32> to vector<8xf32>
    %57 = vector.shape_cast %56 : vector<8xf32> to vector<8x1xf32>
    %58 = tpu.reciprocal %57 {approx = true} : vector<8x1xf32> -> vector<8x1xf32>
    %59 = vector.broadcast %58 : vector<8x1xf32> to vector<8x8xf32>
    %60 = arith.mulf %55, %59 : vector<8x8xf32>
    %61 = arith.truncf %60 : vector<8x8xf32> to vector<8x8xbf16>
    %62 = arith.truncf %43 : vector<8x16xf32> to vector<8x16xbf16>
    %cst_27 = arith.constant dense<0.000000e+00> : vector<8x16xf32>
    %63 = tpu.matmul %61, %62, %cst_27 {dimension_numbers = #tpu.dot_dimension_numbers<[1], [0], [0], [1], [0, 0, 1, 1], [], []>} : vector<8x8xbf16>, vector<8x16xbf16>, vector<8x16xf32> -> vector<8x16xf32>
    %64 = vector.extract_strided_slice %40 {offsets = [0, 0], sizes = [16, 32], strides = [1, 1]} : vector<32x32xf32> to vector<16x32xf32>
    %65 = arith.truncf %63 : vector<8x16xf32> to vector<8x16xbf16>
    %66 = arith.truncf %64 : vector<16x32xf32> to vector<16x32xbf16>
    %cst_28 = arith.constant dense<0.000000e+00> : vector<8x32xf32>
    %67 = tpu.matmul %65, %66, %cst_28 {dimension_numbers = #tpu.dot_dimension_numbers<[1], [0], [0], [1], [0, 0, 1, 1], [], []>} : vector<8x16xbf16>, vector<16x32xbf16>, vector<8x32xf32> -> vector<8x32xf32>
    %68 = vector.extract_strided_slice %38 {offsets = [0, 16], sizes = [8, 16], strides = [1, 1]} : vector<8x96xf32> to vector<8x16xf32>
    %69 = vector.extract_strided_slice %38 {offsets = [0, 48], sizes = [8, 16], strides = [1, 1]} : vector<8x96xf32> to vector<8x16xf32>
    %70 = vector.extract_strided_slice %38 {offsets = [0, 80], sizes = [8, 16], strides = [1, 1]} : vector<8x96xf32> to vector<8x16xf32>
    %71 = arith.truncf %68 : vector<8x16xf32> to vector<8x16xbf16>
    %72 = arith.truncf %69 : vector<8x16xf32> to vector<8x16xbf16>
    %cst_29 = arith.constant dense<0.000000e+00> : vector<8x8xf32>
    %73 = tpu.matmul %71, %72, %cst_29 {dimension_numbers = #tpu.dot_dimension_numbers<[1], [1], [0], [0], [0, 0, 1, 0], [], []>} : vector<8x16xbf16>, vector<8x16xbf16>, vector<8x8xf32> -> vector<8x8xf32>
    %cst_30 = arith.constant 2.500000e-01 : f32
    %74 = vector.broadcast %cst_30 : f32 to vector<8x8xf32>
    %75 = arith.mulf %73, %74 : vector<8x8xf32>
    %76 = vector.broadcast %3 : vector<1x8xf32> to vector<8x8xf32>
    %77 = arith.addf %75, %76 : vector<8x8xf32>
    %cst_31 = arith.constant dense<0xFF800000> : vector<8xf32>
    %78 = vector.multi_reduction <maximumf>, %77, %cst_31 [1] : vector<8x8xf32> to vector<8xf32>
    %79 = vector.shape_cast %78 : vector<8xf32> to vector<8x1xf32>
    %80 = vector.broadcast %79 : vector<8x1xf32> to vector<8x8xf32>
    %81 = arith.subf %77, %80 : vector<8x8xf32>
    %82 = math.exp %81 : vector<8x8xf32>
    %cst_32 = arith.constant dense<0.000000e+00> : vector<8xf32>
    %83 = vector.multi_reduction <add>, %82, %cst_32 [1] : vector<8x8xf32> to vector<8xf32>
    %84 = vector.shape_cast %83 : vector<8xf32> to vector<8x1xf32>
    %85 = tpu.reciprocal %84 {approx = true} : vector<8x1xf32> -> vector<8x1xf32>
    %86 = vector.broadcast %85 : vector<8x1xf32> to vector<8x8xf32>
    %87 = arith.mulf %82, %86 : vector<8x8xf32>
    %88 = arith.truncf %87 : vector<8x8xf32> to vector<8x8xbf16>
    %89 = arith.truncf %70 : vector<8x16xf32> to vector<8x16xbf16>
    %cst_33 = arith.constant dense<0.000000e+00> : vector<8x16xf32>
    %90 = tpu.matmul %88, %89, %cst_33 {dimension_numbers = #tpu.dot_dimension_numbers<[1], [0], [0], [1], [0, 0, 1, 1], [], []>} : vector<8x8xbf16>, vector<8x16xbf16>, vector<8x16xf32> -> vector<8x16xf32>
    %91 = vector.extract_strided_slice %40 {offsets = [16, 0], sizes = [16, 32], strides = [1, 1]} : vector<32x32xf32> to vector<16x32xf32>
    %92 = arith.truncf %90 : vector<8x16xf32> to vector<8x16xbf16>
    %93 = arith.truncf %91 : vector<16x32xf32> to vector<16x32xbf16>
    %cst_34 = arith.constant dense<0.000000e+00> : vector<8x32xf32>
    %94 = tpu.matmul %92, %93, %cst_34 {dimension_numbers = #tpu.dot_dimension_numbers<[1], [0], [0], [1], [0, 0, 1, 1], [], []>} : vector<8x16xbf16>, vector<16x32xbf16>, vector<8x32xf32> -> vector<8x32xf32>
    %95 = arith.addf %67, %94 : vector<8x32xf32>
    %c0_35 = arith.constant 0 : index
    %c0_36 = arith.constant 0 : index
    %c0_37 = arith.constant 0 : index
    %96 = vector.load %arg8[%c0_35, %c0_36, %c0_37] : memref<2x1x32xf32, #tpu.memory_space<vmem>>, vector<1x1x32xf32>
    %97 = vector.shape_cast %96 : vector<1x1x32xf32> to vector<1x32xf32>
    %98 = vector.broadcast %97 : vector<1x32xf32> to vector<8x32xf32>
    %99 = arith.addf %95, %98 : vector<8x32xf32>
    %100 = arith.addf %99, %29 : vector<8x32xf32>
    %c0_38 = arith.constant 0 : index
    %c0_39 = arith.constant 0 : index
    %c0_40 = arith.constant 0 : index
    %101 = vector.load %arg9[%c0_38, %c0_39, %c0_40] : memref<2x1x32xf32, #tpu.memory_space<vmem>>, vector<1x1x32xf32>
    %102 = vector.shape_cast %101 : vector<1x1x32xf32> to vector<1x32xf32>
    %c0_41 = arith.constant 0 : index
    %c0_42 = arith.constant 0 : index
    %c0_43 = arith.constant 0 : index
    %103 = vector.load %arg10[%c0_41, %c0_42, %c0_43] : memref<2x1x32xf32, #tpu.memory_space<vmem>>, vector<1x1x32xf32>
    %104 = vector.shape_cast %103 : vector<1x1x32xf32> to vector<1x32xf32>
    %cst_44 = arith.constant dense<0.000000e+00> : vector<8xf32>
    %105 = vector.multi_reduction <add>, %100, %cst_44 [1] : vector<8x32xf32> to vector<8xf32>
    %106 = vector.shape_cast %105 : vector<8xf32> to vector<8x1xf32>
    %cst_45 = arith.constant 3.200000e+01 : f32
    %107 = vector.broadcast %cst_45 : f32 to vector<8x1xf32>
    %108 = arith.divf %106, %107 : vector<8x1xf32>
    %109 = vector.broadcast %108 : vector<8x1xf32> to vector<8x32xf32>
    %110 = arith.subf %100, %109 : vector<8x32xf32>
    %111 = vector.broadcast %108 : vector<8x1xf32> to vector<8x32xf32>
    %112 = arith.subf %100, %111 : vector<8x32xf32>
    %113 = arith.mulf %110, %112 : vector<8x32xf32>
    %cst_46 = arith.constant dense<0.000000e+00> : vector<8xf32>
    %114 = vector.multi_reduction <add>, %113, %cst_46 [1] : vector<8x32xf32> to vector<8xf32>
    %115 = vector.shape_cast %114 : vector<8xf32> to vector<8x1xf32>
    %cst_47 = arith.constant 3.200000e+01 : f32
    %116 = vector.broadcast %cst_47 : f32 to vector<8x1xf32>
    %117 = arith.divf %115, %116 : vector<8x1xf32>
    %118 = vector.broadcast %108 : vector<8x1xf32> to vector<8x32xf32>
    %119 = arith.subf %100, %118 : vector<8x32xf32>
    %cst_48 = arith.constant 9.99999996E-13 : f32
    %120 = vector.broadcast %cst_48 : f32 to vector<8x1xf32>
    %121 = arith.addf %117, %120 : vector<8x1xf32>
    %122 = math.rsqrt %121 : vector<8x1xf32>
    %123 = vector.broadcast %122 : vector<8x1xf32> to vector<8x32xf32>
    %124 = arith.mulf %119, %123 : vector<8x32xf32>
    %125 = vector.broadcast %102 : vector<1x32xf32> to vector<8x32xf32>
    %126 = arith.mulf %124, %125 : vector<8x32xf32>
    %127 = vector.broadcast %104 : vector<1x32xf32> to vector<8x32xf32>
    %128 = arith.addf %126, %127 : vector<8x32xf32>
    %c0_49 = arith.constant 0 : index
    %c0_50 = arith.constant 0 : index
    %c0_51 = arith.constant 0 : index
    %129 = vector.load %arg11[%c0_49, %c0_50, %c0_51] : memref<2x32x64xf32, #tpu.memory_space<vmem>>, vector<1x32x64xf32>
    %130 = vector.shape_cast %129 : vector<1x32x64xf32> to vector<32x64xf32>
    %131 = arith.truncf %128 : vector<8x32xf32> to vector<8x32xbf16>
    %132 = arith.truncf %130 : vector<32x64xf32> to vector<32x64xbf16>
    %cst_52 = arith.constant dense<0.000000e+00> : vector<8x64xf32>
    %133 = tpu.matmul %131, %132, %cst_52 {dimension_numbers = #tpu.dot_dimension_numbers<[1], [0], [0], [1], [0, 0, 1, 1], [], []>} : vector<8x32xbf16>, vector<32x64xbf16>, vector<8x64xf32> -> vector<8x64xf32>
    %c0_53 = arith.constant 0 : index
    %c0_54 = arith.constant 0 : index
    %c0_55 = arith.constant 0 : index
    %134 = vector.load %arg12[%c0_53, %c0_54, %c0_55] : memref<2x1x64xf32, #tpu.memory_space<vmem>>, vector<1x1x64xf32>
    %135 = vector.shape_cast %134 : vector<1x1x64xf32> to vector<1x64xf32>
    %136 = vector.broadcast %135 : vector<1x64xf32> to vector<8x64xf32>
    %137 = arith.addf %133, %136 : vector<8x64xf32>
    %138 = arith.mulf %137, %137 : vector<8x64xf32>
    %139 = arith.mulf %137, %138 : vector<8x64xf32>
    %cst_56 = arith.constant 4.471500e-02 : f32
    %140 = vector.broadcast %cst_56 : f32 to vector<8x64xf32>
    %141 = arith.mulf %140, %139 : vector<8x64xf32>
    %142 = arith.addf %137, %141 : vector<8x64xf32>
    %cst_57 = arith.constant 0.797884583 : f32
    %143 = vector.broadcast %cst_57 : f32 to vector<8x64xf32>
    %144 = arith.mulf %143, %142 : vector<8x64xf32>
    %145 = math.tanh %144 : vector<8x64xf32>
    %cst_58 = arith.constant 1.000000e+00 : f32
    %146 = vector.broadcast %cst_58 : f32 to vector<8x64xf32>
    %147 = arith.addf %146, %145 : vector<8x64xf32>
    %cst_59 = arith.constant 5.000000e-01 : f32
    %148 = vector.broadcast %cst_59 : f32 to vector<8x64xf32>
    %149 = arith.mulf %148, %147 : vector<8x64xf32>
    %150 = arith.mulf %137, %149 : vector<8x64xf32>
    %c0_60 = arith.constant 0 : index
    %c0_61 = arith.constant 0 : index
    %c0_62 = arith.constant 0 : index
    %151 = vector.load %arg13[%c0_60, %c0_61, %c0_62] : memref<2x64x32xf32, #tpu.memory_space<vmem>>, vector<1x64x32xf32>
    %152 = vector.shape_cast %151 : vector<1x64x32xf32> to vector<64x32xf32>
    %153 = arith.truncf %150 : vector<8x64xf32> to vector<8x64xbf16>
    %154 = arith.truncf %152 : vector<64x32xf32> to vector<64x32xbf16>
    %cst_63 = arith.constant dense<0.000000e+00> : vector<8x32xf32>
    %155 = tpu.matmul %153, %154, %cst_63 {dimension_numbers = #tpu.dot_dimension_numbers<[1], [0], [0], [1], [0, 0, 1, 1], [], []>} : vector<8x64xbf16>, vector<64x32xbf16>, vector<8x32xf32> -> vector<8x32xf32>
    %c0_64 = arith.constant 0 : index
    %c0_65 = arith.constant 0 : index
    %c0_66 = arith.constant 0 : index
    %156 = vector.load %arg14[%c0_64, %c0_65, %c0_66] : memref<2x1x32xf32, #tpu.memory_space<vmem>>, vector<1x1x32xf32>
    %157 = vector.shape_cast %156 : vector<1x1x32xf32> to vector<1x32xf32>
    %158 = vector.broadcast %157 : vector<1x32xf32> to vector<8x32xf32>
    %159 = arith.addf %155, %158 : vector<8x32xf32>
    %160 = arith.addf %159, %128 : vector<8x32xf32>
    %c0_67 = arith.constant 0 : index
    %c0_68 = arith.constant 0 : index
    %c0_69 = arith.constant 0 : index
    %161 = vector.load %arg15[%c0_67, %c0_68, %c0_69] : memref<2x1x32xf32, #tpu.memory_space<vmem>>, vector<1x1x32xf32>
    %162 = vector.shape_cast %161 : vector<1x1x32xf32> to vector<1x32xf32>
    %c0_70 = arith.constant 0 : index
    %c0_71 = arith.constant 0 : index
    %c0_72 = arith.constant 0 : index
    %163 = vector.load %arg16[%c0_70, %c0_71, %c0_72] : memref<2x1x32xf32, #tpu.memory_space<vmem>>, vector<1x1x32xf32>
    %164 = vector.shape_cast %163 : vector<1x1x32xf32> to vector<1x32xf32>
    %cst_73 = arith.constant dense<0.000000e+00> : vector<8xf32>
    %165 = vector.multi_reduction <add>, %160, %cst_73 [1] : vector<8x32xf32> to vector<8xf32>
    %166 = vector.shape_cast %165 : vector<8xf32> to vector<8x1xf32>
    %cst_74 = arith.constant 3.200000e+01 : f32
    %167 = vector.broadcast %cst_74 : f32 to vector<8x1xf32>
    %168 = arith.divf %166, %167 : vector<8x1xf32>
    %169 = vector.broadcast %168 : vector<8x1xf32> to vector<8x32xf32>
    %170 = arith.subf %160, %169 : vector<8x32xf32>
    %171 = vector.broadcast %168 : vector<8x1xf32> to vector<8x32xf32>
    %172 = arith.subf %160, %171 : vector<8x32xf32>
    %173 = arith.mulf %170, %172 : vector<8x32xf32>
    %cst_75 = arith.constant dense<0.000000e+00> : vector<8xf32>
    %174 = vector.multi_reduction <add>, %173, %cst_75 [1] : vector<8x32xf32> to vector<8xf32>
    %175 = vector.shape_cast %174 : vector<8xf32> to vector<8x1xf32>
    %cst_76 = arith.constant 3.200000e+01 : f32
    %176 = vector.broadcast %cst_76 : f32 to vector<8x1xf32>
    %177 = arith.divf %175, %176 : vector<8x1xf32>
    %178 = vector.broadcast %168 : vector<8x1xf32> to vector<8x32xf32>
    %179 = arith.subf %160, %178 : vector<8x32xf32>
    %cst_77 = arith.constant 9.99999996E-13 : f32
    %180 = vector.broadcast %cst_77 : f32 to vector<8x1xf32>
    %181 = arith.addf %177, %180 : vector<8x1xf32>
    %182 = math.rsqrt %181 : vector<8x1xf32>
    %183 = vector.broadcast %182 : vector<8x1xf32> to vector<8x32xf32>
    %184 = arith.mulf %179, %183 : vector<8x32xf32>
    %185 = vector.broadcast %162 : vector<1x32xf32> to vector<8x32xf32>
    %186 = arith.mulf %184, %185 : vector<8x32xf32>
    %187 = vector.broadcast %164 : vector<1x32xf32> to vector<8x32xf32>
    %188 = arith.addf %186, %187 : vector<8x32xf32>
    %c1 = arith.constant 1 : index
    %c0_78 = arith.constant 0 : index
    %c0_79 = arith.constant 0 : index
    %189 = vector.load %arg5[%c1, %c0_78, %c0_79] : memref<2x32x96xf32, #tpu.memory_space<vmem>>, vector<1x32x96xf32>
    %190 = vector.shape_cast %189 : vector<1x32x96xf32> to vector<32x96xf32>
    %191 = arith.truncf %188 : vector<8x32xf32> to vector<8x32xbf16>
    %192 = arith.truncf %190 : vector<32x96xf32> to vector<32x96xbf16>
    %cst_80 = arith.constant dense<0.000000e+00> : vector<8x96xf32>
    %193 = tpu.matmul %191, %192, %cst_80 {dimension_numbers = #tpu.dot_dimension_numbers<[1], [0], [0], [1], [0, 0, 1, 1], [], []>} : vector<8x32xbf16>, vector<32x96xbf16>, vector<8x96xf32> -> vector<8x96xf32>
    %c1_81 = arith.constant 1 : index
    %c0_82 = arith.constant 0 : index
    %c0_83 = arith.constant 0 : index
    %194 = vector.load %arg6[%c1_81, %c0_82, %c0_83] : memref<2x1x96xf32, #tpu.memory_space<vmem>>, vector<1x1x96xf32>
    %195 = vector.shape_cast %194 : vector<1x1x96xf32> to vector<1x96xf32>
    %196 = vector.broadcast %195 : vector<1x96xf32> to vector<8x96xf32>
    %197 = arith.addf %193, %196 : vector<8x96xf32>
    %c1_84 = arith.constant 1 : index
    %c0_85 = arith.constant 0 : index
    %c0_86 = arith.constant 0 : index
    %198 = vector.load %arg7[%c1_84, %c0_85, %c0_86] : memref<2x32x32xf32, #tpu.memory_space<vmem>>, vector<1x32x32xf32>
    %199 = vector.shape_cast %198 : vector<1x32x32xf32> to vector<32x32xf32>
    %200 = vector.extract_strided_slice %197 {offsets = [0, 0], sizes = [8, 16], strides = [1, 1]} : vector<8x96xf32> to vector<8x16xf32>
    %201 = vector.extract_strided_slice %197 {offsets = [0, 32], sizes = [8, 16], strides = [1, 1]} : vector<8x96xf32> to vector<8x16xf32>
    %202 = vector.extract_strided_slice %197 {offsets = [0, 64], sizes = [8, 16], strides = [1, 1]} : vector<8x96xf32> to vector<8x16xf32>
    %203 = arith.truncf %200 : vector<8x16xf32> to vector<8x16xbf16>
    %204 = arith.truncf %201 : vector<8x16xf32> to vector<8x16xbf16>
    %cst_87 = arith.constant dense<0.000000e+00> : vector<8x8xf32>
    %205 = tpu.matmul %203, %204, %cst_87 {dimension_numbers = #tpu.dot_dimension_numbers<[1], [1], [0], [0], [0, 0, 1, 0], [], []>} : vector<8x16xbf16>, vector<8x16xbf16>, vector<8x8xf32> -> vector<8x8xf32>
    %cst_88 = arith.constant 2.500000e-01 : f32
    %206 = vector.broadcast %cst_88 : f32 to vector<8x8xf32>
    %207 = arith.mulf %205, %206 : vector<8x8xf32>
    %208 = vector.broadcast %3 : vector<1x8xf32> to vector<8x8xf32>
    %209 = arith.addf %207, %208 : vector<8x8xf32>
    %cst_89 = arith.constant dense<0xFF800000> : vector<8xf32>
    %210 = vector.multi_reduction <maximumf>, %209, %cst_89 [1] : vector<8x8xf32> to vector<8xf32>
    %211 = vector.shape_cast %210 : vector<8xf32> to vector<8x1xf32>
    %212 = vector.broadcast %211 : vector<8x1xf32> to vector<8x8xf32>
    %213 = arith.subf %209, %212 : vector<8x8xf32>
    %214 = math.exp %213 : vector<8x8xf32>
    %cst_90 = arith.constant dense<0.000000e+00> : vector<8xf32>
    %215 = vector.multi_reduction <add>, %214, %cst_90 [1] : vector<8x8xf32> to vector<8xf32>
    %216 = vector.shape_cast %215 : vector<8xf32> to vector<8x1xf32>
    %217 = tpu.reciprocal %216 {approx = true} : vector<8x1xf32> -> vector<8x1xf32>
    %218 = vector.broadcast %217 : vector<8x1xf32> to vector<8x8xf32>
    %219 = arith.mulf %214, %218 : vector<8x8xf32>
    %220 = arith.truncf %219 : vector<8x8xf32> to vector<8x8xbf16>
    %221 = arith.truncf %202 : vector<8x16xf32> to vector<8x16xbf16>
    %cst_91 = arith.constant dense<0.000000e+00> : vector<8x16xf32>
    %222 = tpu.matmul %220, %221, %cst_91 {dimension_numbers = #tpu.dot_dimension_numbers<[1], [0], [0], [1], [0, 0, 1, 1], [], []>} : vector<8x8xbf16>, vector<8x16xbf16>, vector<8x16xf32> -> vector<8x16xf32>
    %223 = vector.extract_strided_slice %199 {offsets = [0, 0], sizes = [16, 32], strides = [1, 1]} : vector<32x32xf32> to vector<16x32xf32>
    %224 = arith.truncf %222 : vector<8x16xf32> to vector<8x16xbf16>
    %225 = arith.truncf %223 : vector<16x32xf32> to vector<16x32xbf16>
    %cst_92 = arith.constant dense<0.000000e+00> : vector<8x32xf32>
    %226 = tpu.matmul %224, %225, %cst_92 {dimension_numbers = #tpu.dot_dimension_numbers<[1], [0], [0], [1], [0, 0, 1, 1], [], []>} : vector<8x16xbf16>, vector<16x32xbf16>, vector<8x32xf32> -> vector<8x32xf32>
    %227 = vector.extract_strided_slice %197 {offsets = [0, 16], sizes = [8, 16], strides = [1, 1]} : vector<8x96xf32> to vector<8x16xf32>
    %228 = vector.extract_strided_slice %197 {offsets = [0, 48], sizes = [8, 16], strides = [1, 1]} : vector<8x96xf32> to vector<8x16xf32>
    %229 = vector.extract_strided_slice %197 {offsets = [0, 80], sizes = [8, 16], strides = [1, 1]} : vector<8x96xf32> to vector<8x16xf32>
    %230 = arith.truncf %227 : vector<8x16xf32> to vector<8x16xbf16>
    %231 = arith.truncf %228 : vector<8x16xf32> to vector<8x16xbf16>
    %cst_93 = arith.constant dense<0.000000e+00> : vector<8x8xf32>
    %232 = tpu.matmul %230, %231, %cst_93 {dimension_numbers = #tpu.dot_dimension_numbers<[1], [1], [0], [0], [0, 0, 1, 0], [], []>} : vector<8x16xbf16>, vector<8x16xbf16>, vector<8x8xf32> -> vector<8x8xf32>
    %cst_94 = arith.constant 2.500000e-01 : f32
    %233 = vector.broadcast %cst_94 : f32 to vector<8x8xf32>
    %234 = arith.mulf %232, %233 : vector<8x8xf32>
    %235 = vector.broadcast %3 : vector<1x8xf32> to vector<8x8xf32>
    %236 = arith.addf %234, %235 : vector<8x8xf32>
    %cst_95 = arith.constant dense<0xFF800000> : vector<8xf32>
    %237 = vector.multi_reduction <maximumf>, %236, %cst_95 [1] : vector<8x8xf32> to vector<8xf32>
    %238 = vector.shape_cast %237 : vector<8xf32> to vector<8x1xf32>
    %239 = vector.broadcast %238 : vector<8x1xf32> to vector<8x8xf32>
    %240 = arith.subf %236, %239 : vector<8x8xf32>
    %241 = math.exp %240 : vector<8x8xf32>
    %cst_96 = arith.constant dense<0.000000e+00> : vector<8xf32>
    %242 = vector.multi_reduction <add>, %241, %cst_96 [1] : vector<8x8xf32> to vector<8xf32>
    %243 = vector.shape_cast %242 : vector<8xf32> to vector<8x1xf32>
    %244 = tpu.reciprocal %243 {approx = true} : vector<8x1xf32> -> vector<8x1xf32>
    %245 = vector.broadcast %244 : vector<8x1xf32> to vector<8x8xf32>
    %246 = arith.mulf %241, %245 : vector<8x8xf32>
    %247 = arith.truncf %246 : vector<8x8xf32> to vector<8x8xbf16>
    %248 = arith.truncf %229 : vector<8x16xf32> to vector<8x16xbf16>
    %cst_97 = arith.constant dense<0.000000e+00> : vector<8x16xf32>
    %249 = tpu.matmul %247, %248, %cst_97 {dimension_numbers = #tpu.dot_dimension_numbers<[1], [0], [0], [1], [0, 0, 1, 1], [], []>} : vector<8x8xbf16>, vector<8x16xbf16>, vector<8x16xf32> -> vector<8x16xf32>
    %250 = vector.extract_strided_slice %199 {offsets = [16, 0], sizes = [16, 32], strides = [1, 1]} : vector<32x32xf32> to vector<16x32xf32>
    %251 = arith.truncf %249 : vector<8x16xf32> to vector<8x16xbf16>
    %252 = arith.truncf %250 : vector<16x32xf32> to vector<16x32xbf16>
    %cst_98 = arith.constant dense<0.000000e+00> : vector<8x32xf32>
    %253 = tpu.matmul %251, %252, %cst_98 {dimension_numbers = #tpu.dot_dimension_numbers<[1], [0], [0], [1], [0, 0, 1, 1], [], []>} : vector<8x16xbf16>, vector<16x32xbf16>, vector<8x32xf32> -> vector<8x32xf32>
    %254 = arith.addf %226, %253 : vector<8x32xf32>
    %c1_99 = arith.constant 1 : index
    %c0_100 = arith.constant 0 : index
    %c0_101 = arith.constant 0 : index
    %255 = vector.load %arg8[%c1_99, %c0_100, %c0_101] : memref<2x1x32xf32, #tpu.memory_space<vmem>>, vector<1x1x32xf32>
    %256 = vector.shape_cast %255 : vector<1x1x32xf32> to vector<1x32xf32>
    %257 = vector.broadcast %256 : vector<1x32xf32> to vector<8x32xf32>
    %258 = arith.addf %254, %257 : vector<8x32xf32>
    %259 = arith.addf %258, %188 : vector<8x32xf32>
    %c1_102 = arith.constant 1 : index
    %c0_103 = arith.constant 0 : index
    %c0_104 = arith.constant 0 : index
    %260 = vector.load %arg9[%c1_102, %c0_103, %c0_104] : memref<2x1x32xf32, #tpu.memory_space<vmem>>, vector<1x1x32xf32>
    %261 = vector.shape_cast %260 : vector<1x1x32xf32> to vector<1x32xf32>
    %c1_105 = arith.constant 1 : index
    %c0_106 = arith.constant 0 : index
    %c0_107 = arith.constant 0 : index
    %262 = vector.load %arg10[%c1_105, %c0_106, %c0_107] : memref<2x1x32xf32, #tpu.memory_space<vmem>>, vector<1x1x32xf32>
    %263 = vector.shape_cast %262 : vector<1x1x32xf32> to vector<1x32xf32>
    %cst_108 = arith.constant dense<0.000000e+00> : vector<8xf32>
    %264 = vector.multi_reduction <add>, %259, %cst_108 [1] : vector<8x32xf32> to vector<8xf32>
    %265 = vector.shape_cast %264 : vector<8xf32> to vector<8x1xf32>
    %cst_109 = arith.constant 3.200000e+01 : f32
    %266 = vector.broadcast %cst_109 : f32 to vector<8x1xf32>
    %267 = arith.divf %265, %266 : vector<8x1xf32>
    %268 = vector.broadcast %267 : vector<8x1xf32> to vector<8x32xf32>
    %269 = arith.subf %259, %268 : vector<8x32xf32>
    %270 = vector.broadcast %267 : vector<8x1xf32> to vector<8x32xf32>
    %271 = arith.subf %259, %270 : vector<8x32xf32>
    %272 = arith.mulf %269, %271 : vector<8x32xf32>
    %cst_110 = arith.constant dense<0.000000e+00> : vector<8xf32>
    %273 = vector.multi_reduction <add>, %272, %cst_110 [1] : vector<8x32xf32> to vector<8xf32>
    %274 = vector.shape_cast %273 : vector<8xf32> to vector<8x1xf32>
    %cst_111 = arith.constant 3.200000e+01 : f32
    %275 = vector.broadcast %cst_111 : f32 to vector<8x1xf32>
    %276 = arith.divf %274, %275 : vector<8x1xf32>
    %277 = vector.broadcast %267 : vector<8x1xf32> to vector<8x32xf32>
    %278 = arith.subf %259, %277 : vector<8x32xf32>
    %cst_112 = arith.constant 9.99999996E-13 : f32
    %279 = vector.broadcast %cst_112 : f32 to vector<8x1xf32>
    %280 = arith.addf %276, %279 : vector<8x1xf32>
    %281 = math.rsqrt %280 : vector<8x1xf32>
    %282 = vector.broadcast %281 : vector<8x1xf32> to vector<8x32xf32>
    %283 = arith.mulf %278, %282 : vector<8x32xf32>
    %284 = vector.broadcast %261 : vector<1x32xf32> to vector<8x32xf32>
    %285 = arith.mulf %283, %284 : vector<8x32xf32>
    %286 = vector.broadcast %263 : vector<1x32xf32> to vector<8x32xf32>
    %287 = arith.addf %285, %286 : vector<8x32xf32>
    %c1_113 = arith.constant 1 : index
    %c0_114 = arith.constant 0 : index
    %c0_115 = arith.constant 0 : index
    %288 = vector.load %arg11[%c1_113, %c0_114, %c0_115] : memref<2x32x64xf32, #tpu.memory_space<vmem>>, vector<1x32x64xf32>
    %289 = vector.shape_cast %288 : vector<1x32x64xf32> to vector<32x64xf32>
    %290 = arith.truncf %287 : vector<8x32xf32> to vector<8x32xbf16>
    %291 = arith.truncf %289 : vector<32x64xf32> to vector<32x64xbf16>
    %cst_116 = arith.constant dense<0.000000e+00> : vector<8x64xf32>
    %292 = tpu.matmul %290, %291, %cst_116 {dimension_numbers = #tpu.dot_dimension_numbers<[1], [0], [0], [1], [0, 0, 1, 1], [], []>} : vector<8x32xbf16>, vector<32x64xbf16>, vector<8x64xf32> -> vector<8x64xf32>
    %c1_117 = arith.constant 1 : index
    %c0_118 = arith.constant 0 : index
    %c0_119 = arith.constant 0 : index
    %293 = vector.load %arg12[%c1_117, %c0_118, %c0_119] : memref<2x1x64xf32, #tpu.memory_space<vmem>>, vector<1x1x64xf32>
    %294 = vector.shape_cast %293 : vector<1x1x64xf32> to vector<1x64xf32>
    %295 = vector.broadcast %294 : vector<1x64xf32> to vector<8x64xf32>
    %296 = arith.addf %292, %295 : vector<8x64xf32>
    %297 = arith.mulf %296, %296 : vector<8x64xf32>
    %298 = arith.mulf %296, %297 : vector<8x64xf32>
    %cst_120 = arith.constant 4.471500e-02 : f32
    %299 = vector.broadcast %cst_120 : f32 to vector<8x64xf32>
    %300 = arith.mulf %299, %298 : vector<8x64xf32>
    %301 = arith.addf %296, %300 : vector<8x64xf32>
    %cst_121 = arith.constant 0.797884583 : f32
    %302 = vector.broadcast %cst_121 : f32 to vector<8x64xf32>
    %303 = arith.mulf %302, %301 : vector<8x64xf32>
    %304 = math.tanh %303 : vector<8x64xf32>
    %cst_122 = arith.constant 1.000000e+00 : f32
    %305 = vector.broadcast %cst_122 : f32 to vector<8x64xf32>
    %306 = arith.addf %305, %304 : vector<8x64xf32>
    %cst_123 = arith.constant 5.000000e-01 : f32
    %307 = vector.broadcast %cst_123 : f32 to vector<8x64xf32>
    %308 = arith.mulf %307, %306 : vector<8x64xf32>
    %309 = arith.mulf %296, %308 : vector<8x64xf32>
    %c1_124 = arith.constant 1 : index
    %c0_125 = arith.constant 0 : index
    %c0_126 = arith.constant 0 : index
    %310 = vector.load %arg13[%c1_124, %c0_125, %c0_126] : memref<2x64x32xf32, #tpu.memory_space<vmem>>, vector<1x64x32xf32>
    %311 = vector.shape_cast %310 : vector<1x64x32xf32> to vector<64x32xf32>
    %312 = arith.truncf %309 : vector<8x64xf32> to vector<8x64xbf16>
    %313 = arith.truncf %311 : vector<64x32xf32> to vector<64x32xbf16>
    %cst_127 = arith.constant dense<0.000000e+00> : vector<8x32xf32>
    %314 = tpu.matmul %312, %313, %cst_127 {dimension_numbers = #tpu.dot_dimension_numbers<[1], [0], [0], [1], [0, 0, 1, 1], [], []>} : vector<8x64xbf16>, vector<64x32xbf16>, vector<8x32xf32> -> vector<8x32xf32>
    %c1_128 = arith.constant 1 : index
    %c0_129 = arith.constant 0 : index
    %c0_130 = arith.constant 0 : index
    %315 = vector.load %arg14[%c1_128, %c0_129, %c0_130] : memref<2x1x32xf32, #tpu.memory_space<vmem>>, vector<1x1x32xf32>
    %316 = vector.shape_cast %315 : vector<1x1x32xf32> to vector<1x32xf32>
    %317 = vector.broadcast %316 : vector<1x32xf32> to vector<8x32xf32>
    %318 = arith.addf %314, %317 : vector<8x32xf32>
    %319 = arith.addf %318, %287 : vector<8x32xf32>
    %c1_131 = arith.constant 1 : index
    %c0_132 = arith.constant 0 : index
    %c0_133 = arith.constant 0 : index
    %320 = vector.load %arg15[%c1_131, %c0_132, %c0_133] : memref<2x1x32xf32, #tpu.memory_space<vmem>>, vector<1x1x32xf32>
    %321 = vector.shape_cast %320 : vector<1x1x32xf32> to vector<1x32xf32>
    %c1_134 = arith.constant 1 : index
    %c0_135 = arith.constant 0 : index
    %c0_136 = arith.constant 0 : index
    %322 = vector.load %arg16[%c1_134, %c0_135, %c0_136] : memref<2x1x32xf32, #tpu.memory_space<vmem>>, vector<1x1x32xf32>
    %323 = vector.shape_cast %322 : vector<1x1x32xf32> to vector<1x32xf32>
    %cst_137 = arith.constant dense<0.000000e+00> : vector<8xf32>
    %324 = vector.multi_reduction <add>, %319, %cst_137 [1] : vector<8x32xf32> to vector<8xf32>
    %325 = vector.shape_cast %324 : vector<8xf32> to vector<8x1xf32>
    %cst_138 = arith.constant 3.200000e+01 : f32
    %326 = vector.broadcast %cst_138 : f32 to vector<8x1xf32>
    %327 = arith.divf %325, %326 : vector<8x1xf32>
    %328 = vector.broadcast %327 : vector<8x1xf32> to vector<8x32xf32>
    %329 = arith.subf %319, %328 : vector<8x32xf32>
    %330 = vector.broadcast %327 : vector<8x1xf32> to vector<8x32xf32>
    %331 = arith.subf %319, %330 : vector<8x32xf32>
    %332 = arith.mulf %329, %331 : vector<8x32xf32>
    %cst_139 = arith.constant dense<0.000000e+00> : vector<8xf32>
    %333 = vector.multi_reduction <add>, %332, %cst_139 [1] : vector<8x32xf32> to vector<8xf32>
    %334 = vector.shape_cast %333 : vector<8xf32> to vector<8x1xf32>
    %cst_140 = arith.constant 3.200000e+01 : f32
    %335 = vector.broadcast %cst_140 : f32 to vector<8x1xf32>
    %336 = arith.divf %334, %335 : vector<8x1xf32>
    %337 = vector.broadcast %327 : vector<8x1xf32> to vector<8x32xf32>
    %338 = arith.subf %319, %337 : vector<8x32xf32>
    %cst_141 = arith.constant 9.99999996E-13 : f32
    %339 = vector.broadcast %cst_141 : f32 to vector<8x1xf32>
    %340 = arith.addf %336, %339 : vector<8x1xf32>
    %341 = math.rsqrt %340 : vector<8x1xf32>
    %342 = vector.broadcast %341 : vector<8x1xf32> to vector<8x32xf32>
    %343 = arith.mulf %338, %342 : vector<8x32xf32>
    %344 = vector.broadcast %321 : vector<1x32xf32> to vector<8x32xf32>
    %345 = arith.mulf %343, %344 : vector<8x32xf32>
    %346 = vector.broadcast %323 : vector<1x32xf32> to vector<8x32xf32>
    %347 = arith.addf %345, %346 : vector<8x32xf32>
    %c0_142 = arith.constant 0 : index
    %c0_143 = arith.constant 0 : index
    %348 = vector.load %arg18[%c0_142, %c0_143] : memref<1x128xf32, #tpu.memory_space<vmem>>, vector<1x128xf32>
    %349 = vector.extract_strided_slice %347 {offsets = [0, 0], sizes = [1, 32], strides = [1, 1]} : vector<8x32xf32> to vector<1x32xf32>
    %c0_144 = arith.constant 0 : index
    %c0_145 = arith.constant 0 : index
    %c0_146 = arith.constant 0 : index
    %350 = vector.load %arg17[%c0_144, %c0_145, %c0_146] : memref<8x32x128xf32, #tpu.memory_space<vmem>>, vector<1x32x128xf32>
    %351 = vector.shape_cast %350 : vector<1x32x128xf32> to vector<32x128xf32>
    %352 = arith.truncf %349 : vector<1x32xf32> to vector<1x32xbf16>
    %353 = arith.truncf %351 : vector<32x128xf32> to vector<32x128xbf16>
    %cst_147 = arith.constant dense<0.000000e+00> : vector<1x128xf32>
    %354 = tpu.matmul %352, %353, %cst_147 {dimension_numbers = #tpu.dot_dimension_numbers<[1], [0], [0], [1], [0, 0, 1, 1], [], []>} : vector<1x32xbf16>, vector<32x128xbf16>, vector<1x128xf32> -> vector<1x128xf32>
    %355 = arith.addf %348, %354 : vector<1x128xf32>
    %356 = vector.extract_strided_slice %347 {offsets = [1, 0], sizes = [1, 32], strides = [1, 1]} : vector<8x32xf32> to vector<1x32xf32>
    %c1_148 = arith.constant 1 : index
    %c0_149 = arith.constant 0 : index
    %c0_150 = arith.constant 0 : index
    %357 = vector.load %arg17[%c1_148, %c0_149, %c0_150] : memref<8x32x128xf32, #tpu.memory_space<vmem>>, vector<1x32x128xf32>
    %358 = vector.shape_cast %357 : vector<1x32x128xf32> to vector<32x128xf32>
    %359 = arith.truncf %356 : vector<1x32xf32> to vector<1x32xbf16>
    %360 = arith.truncf %358 : vector<32x128xf32> to vector<32x128xbf16>
    %cst_151 = arith.constant dense<0.000000e+00> : vector<1x128xf32>
    %361 = tpu.matmul %359, %360, %cst_151 {dimension_numbers = #tpu.dot_dimension_numbers<[1], [0], [0], [1], [0, 0, 1, 1], [], []>} : vector<1x32xbf16>, vector<32x128xbf16>, vector<1x128xf32> -> vector<1x128xf32>
    %362 = arith.addf %355, %361 : vector<1x128xf32>
    %363 = vector.extract_strided_slice %347 {offsets = [2, 0], sizes = [1, 32], strides = [1, 1]} : vector<8x32xf32> to vector<1x32xf32>
    %c2 = arith.constant 2 : index
    %c0_152 = arith.constant 0 : index
    %c0_153 = arith.constant 0 : index
    %364 = vector.load %arg17[%c2, %c0_152, %c0_153] : memref<8x32x128xf32, #tpu.memory_space<vmem>>, vector<1x32x128xf32>
    %365 = vector.shape_cast %364 : vector<1x32x128xf32> to vector<32x128xf32>
    %366 = arith.truncf %363 : vector<1x32xf32> to vector<1x32xbf16>
    %367 = arith.truncf %365 : vector<32x128xf32> to vector<32x128xbf16>
    %cst_154 = arith.constant dense<0.000000e+00> : vector<1x128xf32>
    %368 = tpu.matmul %366, %367, %cst_154 {dimension_numbers = #tpu.dot_dimension_numbers<[1], [0], [0], [1], [0, 0, 1, 1], [], []>} : vector<1x32xbf16>, vector<32x128xbf16>, vector<1x128xf32> -> vector<1x128xf32>
    %369 = arith.addf %362, %368 : vector<1x128xf32>
    %370 = vector.extract_strided_slice %347 {offsets = [3, 0], sizes = [1, 32], strides = [1, 1]} : vector<8x32xf32> to vector<1x32xf32>
    %c3 = arith.constant 3 : index
    %c0_155 = arith.constant 0 : index
    %c0_156 = arith.constant 0 : index
    %371 = vector.load %arg17[%c3, %c0_155, %c0_156] : memref<8x32x128xf32, #tpu.memory_space<vmem>>, vector<1x32x128xf32>
    %372 = vector.shape_cast %371 : vector<1x32x128xf32> to vector<32x128xf32>
    %373 = arith.truncf %370 : vector<1x32xf32> to vector<1x32xbf16>
    %374 = arith.truncf %372 : vector<32x128xf32> to vector<32x128xbf16>
    %cst_157 = arith.constant dense<0.000000e+00> : vector<1x128xf32>
    %375 = tpu.matmul %373, %374, %cst_157 {dimension_numbers = #tpu.dot_dimension_numbers<[1], [0], [0], [1], [0, 0, 1, 1], [], []>} : vector<1x32xbf16>, vector<32x128xbf16>, vector<1x128xf32> -> vector<1x128xf32>
    %376 = arith.addf %369, %375 : vector<1x128xf32>
    %377 = vector.extract_strided_slice %347 {offsets = [4, 0], sizes = [1, 32], strides = [1, 1]} : vector<8x32xf32> to vector<1x32xf32>
    %c4 = arith.constant 4 : index
    %c0_158 = arith.constant 0 : index
    %c0_159 = arith.constant 0 : index
    %378 = vector.load %arg17[%c4, %c0_158, %c0_159] : memref<8x32x128xf32, #tpu.memory_space<vmem>>, vector<1x32x128xf32>
    %379 = vector.shape_cast %378 : vector<1x32x128xf32> to vector<32x128xf32>
    %380 = arith.truncf %377 : vector<1x32xf32> to vector<1x32xbf16>
    %381 = arith.truncf %379 : vector<32x128xf32> to vector<32x128xbf16>
    %cst_160 = arith.constant dense<0.000000e+00> : vector<1x128xf32>
    %382 = tpu.matmul %380, %381, %cst_160 {dimension_numbers = #tpu.dot_dimension_numbers<[1], [0], [0], [1], [0, 0, 1, 1], [], []>} : vector<1x32xbf16>, vector<32x128xbf16>, vector<1x128xf32> -> vector<1x128xf32>
    %383 = arith.addf %376, %382 : vector<1x128xf32>
    %384 = vector.extract_strided_slice %347 {offsets = [5, 0], sizes = [1, 32], strides = [1, 1]} : vector<8x32xf32> to vector<1x32xf32>
    %c5 = arith.constant 5 : index
    %c0_161 = arith.constant 0 : index
    %c0_162 = arith.constant 0 : index
    %385 = vector.load %arg17[%c5, %c0_161, %c0_162] : memref<8x32x128xf32, #tpu.memory_space<vmem>>, vector<1x32x128xf32>
    %386 = vector.shape_cast %385 : vector<1x32x128xf32> to vector<32x128xf32>
    %387 = arith.truncf %384 : vector<1x32xf32> to vector<1x32xbf16>
    %388 = arith.truncf %386 : vector<32x128xf32> to vector<32x128xbf16>
    %cst_163 = arith.constant dense<0.000000e+00> : vector<1x128xf32>
    %389 = tpu.matmul %387, %388, %cst_163 {dimension_numbers = #tpu.dot_dimension_numbers<[1], [0], [0], [1], [0, 0, 1, 1], [], []>} : vector<1x32xbf16>, vector<32x128xbf16>, vector<1x128xf32> -> vector<1x128xf32>
    %390 = arith.addf %383, %389 : vector<1x128xf32>
    %391 = vector.extract_strided_slice %347 {offsets = [6, 0], sizes = [1, 32], strides = [1, 1]} : vector<8x32xf32> to vector<1x32xf32>
    %c6 = arith.constant 6 : index
    %c0_164 = arith.constant 0 : index
    %c0_165 = arith.constant 0 : index
    %392 = vector.load %arg17[%c6, %c0_164, %c0_165] : memref<8x32x128xf32, #tpu.memory_space<vmem>>, vector<1x32x128xf32>
    %393 = vector.shape_cast %392 : vector<1x32x128xf32> to vector<32x128xf32>
    %394 = arith.truncf %391 : vector<1x32xf32> to vector<1x32xbf16>
    %395 = arith.truncf %393 : vector<32x128xf32> to vector<32x128xbf16>
    %cst_166 = arith.constant dense<0.000000e+00> : vector<1x128xf32>
    %396 = tpu.matmul %394, %395, %cst_166 {dimension_numbers = #tpu.dot_dimension_numbers<[1], [0], [0], [1], [0, 0, 1, 1], [], []>} : vector<1x32xbf16>, vector<32x128xbf16>, vector<1x128xf32> -> vector<1x128xf32>
    %397 = arith.addf %390, %396 : vector<1x128xf32>
    %398 = vector.extract_strided_slice %347 {offsets = [7, 0], sizes = [1, 32], strides = [1, 1]} : vector<8x32xf32> to vector<1x32xf32>
    %c7 = arith.constant 7 : index
    %c0_167 = arith.constant 0 : index
    %c0_168 = arith.constant 0 : index
    %399 = vector.load %arg17[%c7, %c0_167, %c0_168] : memref<8x32x128xf32, #tpu.memory_space<vmem>>, vector<1x32x128xf32>
    %400 = vector.shape_cast %399 : vector<1x32x128xf32> to vector<32x128xf32>
    %401 = arith.truncf %398 : vector<1x32xf32> to vector<1x32xbf16>
    %402 = arith.truncf %400 : vector<32x128xf32> to vector<32x128xbf16>
    %cst_169 = arith.constant dense<0.000000e+00> : vector<1x128xf32>
    %403 = tpu.matmul %401, %402, %cst_169 {dimension_numbers = #tpu.dot_dimension_numbers<[1], [0], [0], [1], [0, 0, 1, 1], [], []>} : vector<1x32xbf16>, vector<32x128xbf16>, vector<1x128xf32> -> vector<1x128xf32>
    %404 = arith.addf %397, %403 : vector<1x128xf32>
    %c0_170 = arith.constant 0 : index
    %c0_171 = arith.constant 0 : index
    %c0_172 = arith.constant 0 : index
    %405 = vector.load %arg19[%c0_170, %c0_171, %c0_172] : memref<1x1x128xf32, #tpu.memory_space<vmem>>, vector<1x1x128xf32>
    %406 = vector.shape_cast %405 : vector<1x1x128xf32> to vector<1x128xf32>
    %407 = vector.shape_cast %404 : vector<1x128xf32> to vector<1x1x128xf32>
    tpu.vector_store %arg19[%c0_170, %c0_171, %c0_172], %407 {strides = array<i32>} : memref<1x1x128xf32, #tpu.memory_space<vmem>>, vector<1x1x128xf32>,
    return
  }
  func.func @transform_0(%arg0: i32) -> (i32, i32, i32) {
    %c0_i32 = arith.constant 0 : i32
    %c0_i32_0 = arith.constant 0 : i32
    %c0_i32_1 = arith.constant 0 : i32
    return %arg0, %c0_i32, %c0_i32_0 : i32, i32, i32
  }
  func.func @transform_1(%arg0: i32) -> (i32, i32, i32) {
    %c0_i32 = arith.constant 0 : i32
    %c0_i32_0 = arith.constant 0 : i32
    %c0_i32_1 = arith.constant 0 : i32
    return %arg0, %c0_i32, %c0_i32_0 : i32, i32, i32
  }
  func.func @transform_2(%arg0: i32) -> (i32, i32) {
    %c0_i32 = arith.constant 0 : i32
    %c0_i32_0 = arith.constant 0 : i32
    %c0_i32_1 = arith.constant 0 : i32
    return %c0_i32, %c0_i32_0 : i32, i32
  }
  func.func @transform_3(%arg0: i32) -> (i32, i32) {
    %c0_i32 = arith.constant 0 : i32
    %c0_i32_0 = arith.constant 0 : i32
    %c0_i32_1 = arith.constant 0 : i32
    return %c0_i32, %c0_i32_0 : i32, i32
  }
  func.func @transform_4(%arg0: i32) -> (i32, i32, i32) {
    %c0_i32 = arith.constant 0 : i32
    %c0_i32_0 = arith.constant 0 : i32
    %c0_i32_1 = arith.constant 0 : i32
    %c0_i32_2 = arith.constant 0 : i32
    return %c0_i32, %c0_i32_0, %c0_i32_1 : i32, i32, i32
  }
  func.func @transform_5(%arg0: i32) -> (i32, i32, i32) {
    %c0_i32 = arith.constant 0 : i32
    %c0_i32_0 = arith.constant 0 : i32
    %c0_i32_1 = arith.constant 0 : i32
    %c0_i32_2 = arith.constant 0 : i32
    return %c0_i32, %c0_i32_0, %c0_i32_1 : i32, i32, i32
  }
  func.func @transform_6(%arg0: i32) -> (i32, i32, i32) {
    %c0_i32 = arith.constant 0 : i32
    %c0_i32_0 = arith.constant 0 : i32
    %c0_i32_1 = arith.constant 0 : i32
    %c0_i32_2 = arith.constant 0 : i32
    return %c0_i32, %c0_i32_0, %c0_i32_1 : i32, i32, i32
  }
  func.func @transform_7(%arg0: i32) -> (i32, i32, i32) {
    %c0_i32 = arith.constant 0 : i32
    %c0_i32_0 = arith.constant 0 : i32
    %c0_i32_1 = arith.constant 0 : i32
    %c0_i32_2 = arith.constant 0 : i32
    return %c0_i32, %c0_i32_0, %c0_i32_1 : i32, i32, i32
  }
  func.func @transform_8(%arg0: i32) -> (i32, i32, i32) {
    %c0_i32 = arith.constant 0 : i32
    %c0_i32_0 = arith.constant 0 : i32
    %c0_i32_1 = arith.constant 0 : i32
    %c0_i32_2 = arith.constant 0 : i32
    return %c0_i32, %c0_i32_0, %c0_i32_1 : i32, i32, i32
  }
  func.func @transform_9(%arg0: i32) -> (i32, i32, i32) {
    %c0_i32 = arith.constant 0 : i32
    %c0_i32_0 = arith.constant 0 : i32
    %c0_i32_1 = arith.constant 0 : i32
    %c0_i32_2 = arith.constant 0 : i32
    return %c0_i32, %c0_i32_0, %c0_i32_1 : i32, i32, i32
  }
  func.func @transform_10(%arg0: i32) -> (i32, i32, i32) {
    %c0_i32 = arith.constant 0 : i32
    %c0_i32_0 = arith.constant 0 : i32
    %c0_i32_1 = arith.constant 0 : i32
    %c0_i32_2 = arith.constant 0 : i32
    return %c0_i32, %c0_i32_0, %c0_i32_1 : i32, i32, i32
  }
  func.func @transform_11(%arg0: i32) -> (i32, i32, i32) {
    %c0_i32 = arith.constant 0 : i32
    %c0_i32_0 = arith.constant 0 : i32
    %c0_i32_1 = arith.constant 0 : i32
    %c0_i32_2 = arith.constant 0 : i32
    return %c0_i32, %c0_i32_0, %c0_i32_1 : i32, i32, i32
  }
  func.func @transform_12(%arg0: i32) -> (i32, i32, i32) {
    %c0_i32 = arith.constant 0 : i32
    %c0_i32_0 = arith.constant 0 : i32
    %c0_i32_1 = arith.constant 0 : i32
    %c0_i32_2 = arith.constant 0 : i32
    return %c0_i32, %c0_i32_0, %c0_i32_1 : i32, i32, i32
  }
  func.func @transform_13(%arg0: i32) -> (i32, i32, i32) {
    %c0_i32 = arith.constant 0 : i32
    %c0_i32_0 = arith.constant 0 : i32
    %c0_i32_1 = arith.constant 0 : i32
    %c0_i32_2 = arith.constant 0 : i32
    return %c0_i32, %c0_i32_0, %c0_i32_1 : i32, i32, i32
  }
  func.func @transform_14(%arg0: i32) -> (i32, i32, i32) {
    %c0_i32 = arith.constant 0 : i32
    %c0_i32_0 = arith.constant 0 : i32
    %c0_i32_1 = arith.constant 0 : i32
    %c0_i32_2 = arith.constant 0 : i32
    return %c0_i32, %c0_i32_0, %c0_i32_1 : i32, i32, i32
  }
  func.func @transform_15(%arg0: i32) -> (i32, i32, i32) {
    %c0_i32 = arith.constant 0 : i32
    %c0_i32_0 = arith.constant 0 : i32
    %c0_i32_1 = arith.constant 0 : i32
    %c0_i32_2 = arith.constant 0 : i32
    return %c0_i32, %c0_i32_0, %c0_i32_1 : i32, i32, i32
  }
  func.func @transform_16(%arg0: i32) -> (i32, i32, i32) {
    %c0_i32 = arith.constant 0 : i32
    %c0_i32_0 = arith.constant 0 : i32
    %c0_i32_1 = arith.constant 0 : i32
    %c0_i32_2 = arith.constant 0 : i32
    return %c0_i32, %c0_i32_0, %c0_i32_1 : i32, i32, i32
  }
  func.func @transform_17(%arg0: i32) -> (i32, i32) {
    %c0_i32 = arith.constant 0 : i32
    %c0_i32_0 = arith.constant 0 : i32
    %c0_i32_1 = arith.constant 0 : i32
    return %c0_i32, %c0_i32_0 : i32, i32
  }
  func.func @transform_18(%arg0: i32) -> (i32, i32, i32) {
    %c0_i32 = arith.constant 0 : i32
    %c0_i32_0 = arith.constant 0 : i32
    %c0_i32_1 = arith.constant 0 : i32
    return %arg0, %c0_i32, %c0_i32_0 : i32, i32, i32
  }
}

</mosaic_0001>

<bundles_post_ra>
// kernel: text_only_sentiment_forward.1
= control target key start
LH: loop header
LB: loop body
LE: loop exit
PB: predicated region body
PF: predicated region fallthrough
CT: control target
= control target key end

     0   :  { %s3498_s0 = inlined_call_operand.vmem [shape: f32[2,8,32], index: 0, kind: input, shape index: {}]   ;;  %s3499_s1 = inlined_call_operand.vmem [shape: f32[2,1,8], index: 1, kind: input, shape index: {}]   ;;  %s3500_s2 = inlined_call_operand.vmem [shape: f32[1,32], index: 2, kind: input, shape index: {}]   ;;  %s3501_s3 = inlined_call_operand.vmem [shape: f32[1,32], index: 3, kind: input, shape index: {}]   ;;  %s3502_s4 = inlined_call_operand.vmem [shape: f32[2,32,96], index: 4, kind: input, shape index: {}]   ;;  %s3503_s5 = inlined_call_operand.vmem [shape: f32[2,1,96], index: 5, kind: input, shape index: {}]   ;;  %s3504_s6 = inlined_call_operand.vmem [shape: f32[2,32,32], index: 6, kind: input, shape index: {}]   ;;  %s3505_s7 = inlined_call_operand.vmem [shape: f32[2,1,32], index: 7, kind: input, shape index: {}]   ;;  %s3506_s8 = inlined_call_operand.vmem [shape: f32[2,1,32], index: 8, kind: input, shape index: {}]   ;;  %s3507_s9 = inlined_call_operand.vmem [shape: f32[2,1,32], index: 9, kind: input, shape index: {}]   ;;  %s3508_s10 = inlined_call_operand.vmem [shape: f32[2,32,64], index: 10, kind: input, shape index: {}]   ;;  %s3509_s11 = inlined_call_operand.vmem [shape: f32[2,1,64], index: 11, kind: input, shape index: {}]   ;;  %s3510_s12 = inlined_call_operand.vmem [shape: f32[2,64,32], index: 12, kind: input, shape index: {}]   ;;  %s3511_s13 = inlined_call_operand.vmem [shape: f32[2,1,32], index: 13, kind: input, shape index: {}]   ;;  %s3512_s14 = inlined_call_operand.vmem [shape: f32[2,1,32], index: 14, kind: input, shape index: {}]   ;;  %s3513_s15 = inlined_call_operand.vmem [shape: f32[2,1,32], index: 15, kind: input, shape index: {}]   ;;  %s3514_s16 = inlined_call_operand.vmem [shape: f32[8,32,128], index: 16, kind: input, shape index: {}]   ;;  %s3515_s17 = inlined_call_operand.vmem [shape: f32[1,128], index: 17, kind: input, shape index: {}]   ;;  %s3516_s18 = inlined_call_operand.hbm [shape: f32[2,1,128], index: 18, kind: output, shape index: {}]  }
   0x1   :  { %3524 = sst [smem:[#allocation9_spill]] %s3498_s0 }
   0x2   :  { %3525 = sst [smem:[#allocation10_spill]] %s3499_s1 }
   0x3   :  { %3526 = sst [smem:[#allocation11_spill]] %s3500_s2 }
   0x4   :  { %23 = vsyncpa [#allocation3], 0 }
   0x5   :  { %25 = vsyncpa [#allocation3 + $0x1], 0  ;;  %s2923_s27 = smov 0   ;;  %s2925_s28 = smov 0  }
   0x6   :  { %s2927_s29 = smov 0   ;;  %s2929_s30 = smov 0  }
   0x7 LB: > { %3527 = sst [smem:[#allocation5_spill]] %s2814_s29  ;;  %s2944_s0 = sadd.s32 4294967295, %s2818_s30   ;;  %s2818_s30 = sphi %s2929_s30, %s3540_s30   ;;  %s2814_s29 = sphi %s2927_s29, %s3542_s29   ;;  %s2810_s28 = sphi %s2925_s28, %s3544_s28   ;;  %s2806_s27 = sphi %s2923_s27, %s3543_s27  }
   0x8   : > { %s2280_s19 = sadd.s32 4294967294, %s2818_s30   ;;  %s2948_s1 = sadd.s32 1, %s2818_s30  }
   0x9   : > { %3528 = sst [smem:[#allocation6_spill]] %s2948_s1  ;;  %s426_s20 = sadd.s32 1, %s2814_s29 }
   0xa   : > { %s423_s21 = ssub.s32 %s2818_s30, %s2948_s1  ;;  %p436_p0 = scmp.ne.s32.totalorder %s2814_s29, %s2810_s28 }
   0xb   : > { %p424_p1 = scmp.eq.s32.totalorder %s423_s21, 0  ;;  %p437_p2 = scmp.eq.s32.totalorder %s2944_s0, 1 }
   0xc   : > { %p442_p3 = scmp.ne.s32.totalorder %s2810_s28, %s2806_s27  ;;  %p443_p4 = scmp.eq.s32.totalorder %s2280_s19, 1 }
   0xd   : > { %s2959_s22 = scalar_select %p424_p1, %s2814_s29, %s426_s20  }
   0xe   : > { %p2961_p5 = por %p437_p2, %p436_p0  ;;  %p2965_p6 = por %p443_p4, %p442_p3 }
   0xf   : > { %3529 = sst [smem:[#allocation7_spill]] %s2959_s22  ;;  %p2283_p7 = scmp.ge.s32.totalorder %s2818_s30, 1 }
  0x10   : > { %s3531_s23 = scalar_select %p2965_p6, 1, 0 }
  0x11   : > { %p522_p8 = scmp.lt.s32.totalorder %s2818_s30, 3 }
  0x12   : > { %3532 = sst [smem:[#allocation8_spill]] %s3531_s23 }
  0x13   : > { %p523_p9 = pnand %p2283_p7, %p522_p8 }
  0x14   : > { %p577_p10 = scmp.lt.s32.totalorder (!%p523_p9), %s2944_s0, 1  ;;  %vm589_vm0 = vcmask (!%p523_p9), 261120   ;;  %s3533_s20 = sld [smem:[#allocation9_spill]] (!%p523_p9)  ;;  %v618_v7 = vld [vmem:[%s3502_s4] sm:$0xff] (!%p523_p9)  ;;  %v619_v8 = vld [vmem:[%s3502_s4 + $0x8] sm:$0xff] (!%p523_p9)  ;;  %v2820_v10 = vmov (!%p523_p9), 0.0  }
  0x15   : > { %526 = sbr.rel (%p523_p9) target bundleno = 6001 (0x1771), region = 92  ;;  %v623_v9 = vpack.c.bf16 (!%p523_p9), %v619_v8, %v618_v7  ;;  %2459 = vmatprep.subr.bf16.mxu0 (!%p523_p9), %v2820_v10  ;;  %v620_v11 = vld [vmem:[%s3502_s4 + $0x10] sm:$0xff] (!%p523_p9)  ;;  %v621_v12 = vld [vmem:[%s3502_s4 + $0x18] sm:$0xff] (!%p523_p9)  ;;  %2503 = vmatprep.subr.bf16.mxu1 (!%p523_p9), %v2820_v10  ;;  %vm2821_vm1 = vmmov (!%p523_p9), 0   ;;  %s3534_s22 = sld [smem:[#allocation11_spill]] (!%p523_p9)  ;;  %vm683_vm2 = vcmask (!%p523_p9), 130048  }
  0x16   : > { %v624_v13 = vpack.c.bf16 (!%p523_p9), %v621_v12, %v620_v11  ;;  %2463 = vmatprep.mubr.msk.bf16.mxu0 (!%p523_p9), %vm2821_vm1, %v2820_v10  ;;  %2507 = vmatprep.mubr.msk.bf16.mxu1 (!%p523_p9), %vm2821_vm1, %v2820_v10  ;;  %v2286_v20 = vld [vmem:[%s3501_s3] ss:$0 sm:$0xff] (!%p523_p9)  ;;  %s3521_s19 = smov (!%p523_p9), 64   ;;  %vm756_vm3 = vcmask (!%p523_p9), 1043456   ;;  %vm738_vm4 = vcmask (!%p523_p9), 64512   ;;  %vm1126_vm5 = vcmask (!%p523_p9), 523264  }
  0x17   : > { %2460 = vmatpush3.bf16.msra.mxu0 (!%p523_p9), %v623_v9  ;;  %v2287_v24 = vld [vmem:[%s3503_s5] ss:$0 sm:$0xff] (!%p523_p9)  ;;  %s2386_s29 = sshll.u32 (!%p523_p9), %s2944_s0, 4 }
  0x18   : > { %2461 = vmatprep.subr.bf16.mxu0 (!%p523_p9), %v2820_v10 }
  0x1b   : > { %2462 = vmatpush3.bf16.msra.mxu0 (!%p523_p9), %v624_v13  ;;  %v2285_v18 = vld [vmem:[%s3534_s22] ss:$0 sm:$0xff] (!%p523_p9)  ;;  %s3535_s22 = sld [smem:[#allocation10_spill]] (!%p523_p9) }
  0x1c   : > { %s2973_s24 = scalar_select %p577_p10, %s2944_s0, 1  ;;  %2467 = vmatprep.subr.bf16.mxu0 %v2820_v10 }
  0x1e   : > { %s2284_s25 = sshll.u32 %s2973_s24, 3 }
  0x1f   : > { %s580_s21 = scalar_lea.vmem %s3533_s20, %s2284_s25  ;;  %s2823_s20 = smov 96  }
  0x20   : > { %v585_v0 = vld [vmem:[%s580_s21] sm:$0xff]  ;;  %s3523_s21 = smov 112   ;;  %s3522_s25 = smov 48  }
  0x21   : > { %v590_v1 = vsel %vm589_vm0, %v585_v0, 0.0  ;;  %s583_s23 = scalar_lea.vmem %s3535_s22, %s2973_s24  ;;  %s2824_s24 = smov 80  }
  0x22   : > { %591 = vadd.xlane.f32.xlu0 %v590_v1  ;;  %v3035_v35 = vld [vmem:[%s583_s23] ss:$0 sm:$0xff] }
  0xaf   : > { %v592_v2 = vpop.xlane.xlu0 %591 }
  0xb0   : > { %v594_v3 = vmul.f32 0.03125, %v592_v2 }
  0xb2   : > { %v595_v4 = vsub.f32 %v585_v0, %v594_v3 }
  0xb4   : > { %v596_v5 = vmul.f32 %v595_v4, %v595_v4 }
  0xb6   : > { %v597_v6 = vsel %vm589_vm0, %v596_v5, 0.0 }
  0xb7   : > { %598 = vadd.xlane.f32.xlu0 %v597_v6 }
 0x144   : > { %v599_v14 = vpop.xlane.xlu0 %598 }
 0x145   : > { %v600_v15 = vmul.f32 0.03125, %v599_v14  ;;  %v677_v14 = vld [vmem:[%s3504_s6 + $0x10] sm:$0xff] }
 0x147   : > { %v601_v16 = vadd.f32 1e-12, %v600_v15  ;;  %v678_v15 = vld [vmem:[%s3504_s6 + $0x18] sm:$0xff] }
 0x149   : > { %2726 = vrsqrt.f32 %v601_v16  ;;  %v915_v16 = vpack.c.bf16 %v678_v15, %v677_v14 }
 0x153   : > { %v2727_v17 = vpop.eup %2726 }
 0x154   : > { %v603_v19 = vmul.f32 %v2727_v17, %v595_v4  ;;  %v675_v17 = vld [vmem:[%s3504_s6] sm:$0xff] }
 0x156   : > { %v610_v21 = vmul.f32 %v2285_v18, %v603_v19  ;;  %v676_v18 = vld [vmem:[%s3504_s6 + $0x8] sm:$0xff] }
 0x158   : > { %v3007_v22 = vadd.f32 %v2286_v20, %v610_v21  ;;  %v801_v20 = vpack.c.bf16 %v676_v18, %v675_v17 }
 0x15a   : > { %v622_v23 = vpack.c.bf16 %v3007_v22, %v3007_v22 }
 0x15c   : > { %2464 = vmatmul.mubr.msk.bf16.vlgmr.msra.gmra.mrb[0].mxu0 %vm589_vm0, %v622_v23 }
 0x15d   : > { %2469 = vmatprep.mubr.msk.bf16.mxu0 %vm2821_vm1, %v2820_v10 }
 0x22f   : > { %v669_v25 = vpop.f32.mrb[0].mxu0 }
 0x230   : > { %v670_v26 = vadd.f32 %v2287_v24, %v669_v25  ;;  %v2465_v27 = vpop.f32.mrb[1].mxu0 }
 0x231   : > { %v672_v28 = vpop.f32.mrb[2].mxu0 }
 0x232   : > { %v3017_v29 = vpack.c.bf16 %v670_v26, %v670_v26  ;;  %v2466_v30 = vpop.f32.mrb[3].mxu0 }
 0x234   : > { %751 = vrot.lane.b32.xlu0 %v3017_v29, %s3521_s19  ;;  %681 = vrot.lane.b32.xlu1 %v3017_v29, %s2823_s20  ;;  %s3536_s19 = smov 112  }
 0x2a6   : > { %v682_v31 = vpop.permute.xlu1 %681  ;;  %v752_v33 = vpop.permute.xlu0 %751 }
 0x2a7   : > { %v688_v32 = vsel %vm683_vm2, %v682_v31, 0  ;;  %v758_v34 = vsel %vm756_vm3, %v752_v33, 0 }
 0x2a8   : > { %2468 = vmatpush3.bf16.xpose.msra.mxu0 %v688_v32  ;;  %v2296_v32 = vld [vmem:[%s3505_s7] ss:$0 sm:$0xff] }
 0x2a9   : > { %2473 = vmatprep.subr.bf16.mxu0 %v2820_v10 }
 0x2af   : > { %2470 = vmatmul.mubr.msk.bf16.vlgmr.msra.gmra.mrb[4].mxu0 %vm683_vm2, %v3017_v29 }
 0x2b0   : > { %2474 = vmatpush3.bf16.msra.mxu0 %v758_v34  ;;  %2475 = vmatprep.mubr.msk.bf16.mxu0 %vm2821_vm1, %v2820_v10 }
 0x2b1   : > { %2479 = vmatprep.subr.bf16.mxu0 %v2820_v10 }
 0x382   : > { %v724_v36 = vpop.f32.mrb[4].mxu0 }
 0x383   : > { %v730_v37 = vmul.f32 0.25, %v724_v36  ;;  %v2471_v38 = vpop.f32.mrb[5].mxu0 }
 0x384   : > { %v727_v39 = vpop.f32.mrb[6].mxu0 }
 0x385   : > { %v2472_v40 = vpop.f32.mrb[7].mxu0  ;;  %v737_v41 = vadd.f32 %v3035_v35, %v730_v37 }
 0x387   : > { %v739_v42 = vsel %vm738_vm4, %v737_v41, -inf }
 0x388   : > { %740 = vmax.xlane.f32.xlu1 %v739_v42 }
 0x415   : > { %v741_v43 = vpop.xlane.xlu1 %740 }
 0x416   : > { %v742_v44 = vsub.f32 %v737_v41, %v741_v43 }
 0x418   : > { %v743_v45 = vmul.f32 1.442695, %v742_v44 }
 0x41a   : > { %2728 = vpow2.f32 %v743_v45 }
 0x424   : > { %v2729_v46 = vpop.eup %2728 }
 0x425   : > { %v745_v47 = vsel %vm738_vm4, %v2729_v46, 0.0 }
 0x426   : > { %746 = vadd.xlane.f32.xlu0 %v745_v47  ;;  %v1041_v47 = vld [vmem:[%s3508_s10 + $0x8] sm:$0xff] }
 0x43c   : > { %804 = vrot.lane.b32.xlu0 %v3017_v29, %s2824_s24 }
 0x440   : > { %802 = vrot.lane.b32.xlu0 %v3017_v29, %s3523_s21  ;;  %s575_s21 = sand.u32 1, %s2810_s28  }
 0x441   : > { %s576_s1 = scalar_lea.vmem [#allocation2], %s575_s21 }
 0x442   : > { %s2216_s22 = sshll.u32 %s576_s1, 4  ;;  %s3458_s22 = int_to_ptr.vmem [resolvable:$true] %s2216_s22 }
 0x443   : > { %s2756_s0 = scalar_lea.vmem %s3458_s22, 16 }
 0x444   : > { %p2757_p11 = scmp.ne.s32.totalorder %s3458_s22, %s2756_s0 }
 0x446   : > { %p2758_p12 = pnand %p2757_p11, %p2961_p5 }
 0x448   : > { %p2759_p13 = pneg %p2758_p12 }
 0x4b3   : > { %v747_v48 = vpop.xlane.xlu0 %746 }
 0x4b4   : > { %2730 = vrcp.f32 %v747_v48 }
 0x4b7   : > { %v805_v51 = vpop.permute.xlu0 %804 }
 0x4b8   : > { %v810_v53 = vsel %vm683_vm2, %v805_v51, 0 }
 0x4bb   : > { %v803_v54 = vpop.permute.xlu0 %802 }
 0x4be   : > { %v2731_v49 = vpop.eup %2730 }
 0x4bf   : > { %v749_v50 = vmul.f32 %v2731_v49, %v2729_v46  ;;  %v1040_v46 = vld [vmem:[%s3508_s10] sm:$0xff]  ;;  %v1043_v49 = vld [vmem:[%s3508_s10 + $0x18] sm:$0xff] }
 0x4c0   : > { %v1045_v48 = vpack.c.bf16 %v1041_v47, %v1040_v46 }
 0x4c1   : > { %v750_v52 = vpack.c.bf16 %v749_v50, %v749_v50 }
 0x4c2   : > { %2504 = vmatpush3.bf16.msra.mxu1 %v1045_v48 }
 0x4c3   : > { %2476 = vmatmul.mubr.msk.bf16.vlgmr.msra.gmra.mrb[8].mxu0 %vm738_vm4, %v750_v52  ;;  %2505 = vmatprep.subr.bf16.mxu1 %v2820_v10 }
 0x4c4   : > { %2480 = vmatpush3.bf16.xpose.msra.mxu0 %v810_v53  ;;  %2481 = vmatprep.mubr.msk.bf16.mxu0 %vm2821_vm1, %v2820_v10 }
 0x4c5   : > { %2485 = vmatprep.subr.bf16.mxu0 %v2820_v10 }
 0x4cb   : > { %2482 = vmatmul.mubr.msk.bf16.vlgmr.msra.gmra.mrb[12].mxu0 %vm683_vm2, %v803_v54 }
 0x4cc   : > { %2487 = vmatprep.mubr.msk.bf16.mxu0 %vm2821_vm1, %v2820_v10 }
 0x596   : > { %v794_v55 = vpop.f32.mrb[8].mxu0 }
 0x597   : > { %v2477_v56 = vpop.f32.mrb[9].mxu0  ;;  %v800_v26 = vpack.c.bf16 %v794_v55, %v794_v55  ;;  %v2297_v55 = vld [vmem:[%s3506_s8] ss:$0 sm:$0xff] }
 0x598   : > { %v797_v57 = vpop.f32.mrb[10].mxu0 }
 0x599   : > { %v2478_v58 = vpop.f32.mrb[11].mxu0  ;;  %v2298_v57 = vld [vmem:[%s3507_s9] ss:$0 sm:$0xff] }
 0x59e   : > { %v846_v59 = vpop.f32.mrb[12].mxu0 }
 0x59f   : > { %v852_v60 = vmul.f32 0.25, %v846_v59  ;;  %v2483_v61 = vpop.f32.mrb[13].mxu0 }
 0x5a0   : > { %v849_v62 = vpop.f32.mrb[14].mxu0  ;;  %v1106_v61 = vld [vmem:[%s3510_s12] sm:$0xff] }
 0x5a1   : > { %v2484_v63 = vpop.f32.mrb[15].mxu0  ;;  %v853_v0 = vadd.f32 %v3035_v35, %v852_v60  ;;  %v1107_v62 = vld [vmem:[%s3510_s12 + $0x8] sm:$0xff] }
 0x5a2   : > { %v1115_v63 = vpack.c.bf16 %v1107_v62, %v1106_v61 }
 0x5a3   : > { %v854_v1 = vsel %vm738_vm4, %v853_v0, -inf }
 0x5a4   : > { %855 = vmax.xlane.f32.xlu1 %v854_v1  ;;  %v1109_v1 = vld [vmem:[%s3510_s12 + $0x18] sm:$0xff] }
 0x5b5   : > { %866 = vrot.lane.b32.xlu1 %v3017_v29, %s3522_s25  ;;  %s2827_s25 = smov [#allocation2]  }
 0x5b6   : > { %s2760_s26 = sshll.u32 %s2827_s25, 4  ;;  %s2761_s26 = int_to_ptr.vmem [resolvable:$false] %s2760_s26 }
 0x5b7   : > { %s2762_s23 = scalar_lea.vmem %s2761_s26, 32  ;;  %p2763_p0 = scmp.lt.s32.totalorder %s3458_s22, %s2761_s26 }
 0x5b8   : > { %p2764_p1 = scmp.lt.s32.totalorder %s2762_s23, %s2756_s0 }
 0x5ba   : > { %p2765_p2 = por %p2764_p1, %p2763_p0 }
 0x5bc   : > { %p2766_p3 = pnand %p2765_p2, %p2759_p13 }
 0x631   : > { %v856_v2 = vpop.xlane.xlu1 %855 }
 0x632   : > { %v857_v3 = vsub.f32 %v853_v0, %v856_v2  ;;  %v1108_v0 = vld [vmem:[%s3510_s12 + $0x10] sm:$0xff] }
 0x633   : > { %v1116_v2 = vpack.c.bf16 %v1109_v1, %v1108_v0 }
 0x634   : > { %v858_v4 = vmul.f32 1.442695, %v857_v3  ;;  %v1110_v3 = vld [vmem:[%s3510_s12 + $0x20] sm:$0xff] }
 0x635   : > { %v867_v5 = vpop.permute.xlu1 %866 }
 0x636   : > { %2732 = vpow2.f32 %v858_v4  ;;  %v872_v6 = vsel %vm756_vm3, %v867_v5, 0  ;;  %v1111_v4 = vld [vmem:[%s3510_s12 + $0x28] sm:$0xff] }
 0x637   : > { %2486 = vmatpush3.bf16.msra.mxu0 %v872_v6  ;;  %v1117_v5 = vpack.c.bf16 %v1111_v4, %v1110_v3  ;;  %v1112_v6 = vld [vmem:[%s3510_s12 + $0x30] sm:$0xff] }
 0x638   : > { %2491 = vmatprep.subr.bf16.mxu0 %v2820_v10 }
 0x640   : > { %v2733_v7 = vpop.eup %2732 }
 0x641   : > { %v860_v8 = vsel %vm738_vm4, %v2733_v7, 0.0 }
 0x642   : > { %861 = vadd.xlane.f32.xlu0 %v860_v8 }
 0x6cf   : > { %v862_v9 = vpop.xlane.xlu0 %861 }
 0x6d0   : > { %2734 = vrcp.f32 %v862_v9  ;;  %v2299_v9 = vld [vmem:[%s3509_s11] ss:$0 sm:$0xff] }
 0x6da   : > { %v2735_v11 = vpop.eup %2734 }
 0x6db   : > { %v864_v12 = vmul.f32 %v2735_v11, %v2733_v7  ;;  %v1113_v7 = vld [vmem:[%s3510_s12 + $0x38] sm:$0xff] }
 0x6dc   : > { %v1118_v8 = vpack.c.bf16 %v1113_v7, %v1112_v6 }
 0x6dd   : > { %v865_v13 = vpack.c.bf16 %v864_v12, %v864_v12 }
 0x6df   : > { %2488 = vmatmul.mubr.msk.bf16.vlgmr.msra.gmra.mrb[16].mxu0 %vm738_vm4, %v865_v13 }
 0x6e0   : > { %2493 = vmatprep.mubr.msk.bf16.mxu0 %vm2821_vm1, %v2820_v10  ;;  %2492 = vmatpush3.bf16.msra.mxu0 %v915_v16 }
 0x6e1   : > { %2497 = vmatprep.subr.bf16.mxu0 %v2820_v10 }
 0x7b2   : > { %v908_v19 = vpop.f32.mrb[16].mxu0 }
 0x7b3   : > { %v914_v21 = vpack.c.bf16 %v908_v19, %v908_v19  ;;  %v2489_v23 = vpop.f32.mrb[17].mxu0 }
 0x7b4   : > { %v911_v24 = vpop.f32.mrb[18].mxu0 }
 0x7b5   : > { %v2490_v25 = vpop.f32.mrb[19].mxu0  ;;  %2494 = vmatmul.mubr.msk.bf16.vlgmr.msra.gmra.mrb[20].mxu0 %vm683_vm2, %v914_v21 }
 0x7b6   : > { %2498 = vmatpush3.bf16.msra.mxu0 %v801_v20  ;;  %2499 = vmatprep.mubr.msk.bf16.mxu0 %vm2821_vm1, %v2820_v10 }
 0x7b7   : > { %2511 = vmatprep.subr.bf16.mxu0 %v2820_v10 }
 0x7bd   : > { %2500 = vmatmul.mubr.msk.bf16.vlgmr.msra.gmra.mrb[24].mxu0 %vm683_vm2, %v800_v26 }
 0x7be   : > { %2519 = vmatprep.mubr.msk.bf16.mxu0 %vm2821_vm1, %v2820_v10  ;;  %2512 = vmatpush3.bf16.msra.mxu0 %v1115_v63 }
 0x7bf   : > { %2513 = vmatprep.subr.bf16.mxu0 %v2820_v10 }
 0x7c2   : > { %2514 = vmatpush3.bf16.msra.mxu0 %v1116_v2 }
 0x7c3   : > { %2515 = vmatprep.subr.bf16.mxu0 %v2820_v10 }
 0x7c6   : > { %2516 = vmatpush3.bf16.msra.mxu0 %v1117_v5 }
 0x7c7   : > { %2517 = vmatprep.subr.bf16.mxu0 %v2820_v10 }
 0x7ca   : > { %2518 = vmatpush3.bf16.msra.mxu0 %v1118_v8 }
 0x7cb   : > { %2537 = vmatprep.subr.bf16.mxu0 %v2820_v10 }
 0x888   : > { %v953_v27 = vpop.f32.mrb[20].mxu0 }
 0x889   : > { %v2495_v28 = vpop.f32.mrb[21].mxu0 }
 0x88a   : > { %v956_v29 = vpop.f32.mrb[22].mxu0 }
 0x88b   : > { %v2496_v30 = vpop.f32.mrb[23].mxu0 }
 0x890   : > { %v996_v31 = vpop.f32.mrb[24].mxu0 }
 0x891   : > { %v997_v33 = vadd.f32 %v996_v31, %v953_v27  ;;  %v2501_v34 = vpop.f32.mrb[25].mxu0  ;;  %v2301_v27 = vld [vmem:[%s3511_s13] ss:$0 sm:$0xff] }
 0x892   : > { %v999_v36 = vpop.f32.mrb[26].mxu0 }
 0x893   : > { %v1009_v37 = vadd.f32 %v2296_v32, %v997_v33  ;;  %v2502_v38 = vpop.f32.mrb[27].mxu0 }
 0x895   : > { %v1010_v39 = vadd.f32 %v1009_v37, %v3007_v22  ;;  %v1042_v22 = vld [vmem:[%s3508_s10 + $0x10] sm:$0xff] }
 0x896   : > { %v1046_v50 = vpack.c.bf16 %v1043_v49, %v1042_v22 }
 0x897   : > { %v1013_v40 = vsel %vm589_vm0, %v1010_v39, 0.0 }
 0x898   : > { %1014 = vadd.xlane.f32.xlu1 %v1013_v40  ;;  %2506 = vmatpush3.bf16.msra.mxu1 %v1046_v50  ;;  %v2303_v50 = vld [vmem:[%s3512_s14] ss:$0 sm:$0xff] }
 0x899   : > { %2523 = vmatprep.subr.bf16.mxu1 %v2820_v10 }
 0x925   : > { %v1015_v41 = vpop.xlane.xlu1 %1014 }
 0x926   : > { %v1016_v42 = vmul.f32 0.03125, %v1015_v41  ;;  %v2305_v41 = vld [vmem:[%s3502_s4 + $0x20] sm:$0xff] }
 0x928   : > { %v1017_v43 = vsub.f32 %v1010_v39, %v1016_v42  ;;  %v2306_v42 = vld [vmem:[%s3502_s4 + $0x28] sm:$0xff] }
 0x92a   : > { %v1018_v44 = vmul.f32 %v1017_v43, %v1017_v43 }
 0x92c   : > { %v1019_v45 = vsel %vm589_vm0, %v1018_v44, 0.0  ;;  %v2307_v44 = vld [vmem:[%s3502_s4 + $0x30] sm:$0xff] }
 0x92d   : > { %1020 = vadd.xlane.f32.xlu0 %v1019_v45  ;;  %v2308_v45 = vld [vmem:[%s3502_s4 + $0x38] sm:$0xff] }
 0x92e   : > { %v1207_v46 = vpack.c.bf16 %v2308_v45, %v2307_v44  ;;  %v2314_v45 = vld [vmem:[%s3504_s6 + $0x30] sm:$0xff] }
 0x9ba   : > { %v1021_v51 = vpop.xlane.xlu0 %1020 }
 0x9bb   : > { %v1022_v52 = vmul.f32 0.03125, %v1021_v51 }
 0x9bd   : > { %v1023_v53 = vadd.f32 1e-12, %v1022_v52  ;;  %v2304_v52 = vld [vmem:[%s3513_s15] ss:$0 sm:$0xff] }
 0x9bf   : > { %2736 = vrsqrt.f32 %v1023_v53 }
 0x9c9   : > { %v2737_v54 = vpop.eup %2736 }
 0x9ca   : > { %v1025_v56 = vmul.f32 %v2737_v54, %v1017_v43  ;;  %v1206_v43 = vpack.c.bf16 %v2306_v42, %v2305_v41  ;;  %v2312_v42 = vld [vmem:[%s3504_s6 + $0x20] sm:$0xff] }
 0x9cc   : > { %v1032_v58 = vmul.f32 %v2297_v55, %v1025_v56  ;;  %v2310_v56 = vld [vmem:[%s3503_s5 + $0x1] ss:$0 sm:$0xff] }
 0x9ce   : > { %v1039_v59 = vadd.f32 %v2298_v57, %v1032_v58 }
 0x9d0   : > { %v1044_v60 = vpack.c.bf16 %v1039_v59, %v1039_v59 }
 0x9d2   : > { %2508 = vmatmul.mubr.msk.bf16.vlgmr.msra.gmra.mrb[0].mxu1 %vm589_vm0, %v1044_v60 }
 0x9d3   : > { %2527 = vmatprep.mubr.msk.bf16.mxu1 %vm2821_vm1, %v2820_v10  ;;  %2524 = vmatpush3.bf16.msra.mxu1 %v1206_v43  ;;  %v2313_v43 = vld [vmem:[%s3504_s6 + $0x28] sm:$0xff] }
 0x9d4   : > { %2525 = vmatprep.subr.bf16.mxu1 %v2820_v10  ;;  %v1377_v44 = vpack.c.bf16 %v2313_v43, %v2312_v42 }
 0x9d7   : > { %2526 = vmatpush3.bf16.msra.mxu1 %v1207_v46  ;;  %v2315_v46 = vld [vmem:[%s3504_s6 + $0x38] sm:$0xff] }
 0x9d8   : > { %2531 = vmatprep.subr.bf16.mxu1 %v2820_v10 }
 0xaa5   : > { %v1091_v11 = vpop.f32.mrb[0].mxu1 }
 0xaa6   : > { %v1092_v12 = vadd.f32 %v2299_v9, %v1091_v11  ;;  %v2509_v13 = vpop.f32.mrb[1].mxu1 }
 0xaa7   : > { %v1094_v14 = vpop.f32.mrb[2].mxu1 }
 0xaa8   : > { %v1097_v15 = vmul.f32 %v1092_v12, %v1092_v12  ;;  %v2510_v16 = vpop.f32.mrb[3].mxu1 }
 0xaaa   : > { %v1098_v17 = vmul.f32 %v1097_v15, %v1092_v12 }
 0xaac   : > { %v1099_v18 = vmul.f32 0.044715, %v1098_v17 }
 0xaae   : > { %v1100_v19 = vadd.f32 %v1099_v18, %v1092_v12 }
 0xab0   : > { %v1101_v20 = vmul.f32 0.7978846, %v1100_v19 }
 0xab2   : > { %2738 = vtanh.f32 %v1101_v20 }
 0xabc   : > { %v2739_v21 = vpop.eup %2738 }
 0xabd   : > { %v1103_v23 = vadd.f32 1.0, %v2739_v21 }
 0xabf   : > { %v1104_v24 = vmul.f32 0.5, %v1103_v23 }
 0xac1   : > { %v1105_v25 = vmul.f32 %v1104_v24, %v1092_v12 }
 0xac3   : > { %v1114_v26 = vpack.c.bf16 %v1105_v25, %v1105_v25 }
 0xac5   : > { %2520 = vmatmul.mubr.msk.bf16.vlgmr.msra.gmra.mrb[28].mxu0 %vm1126_vm5, %v1114_v26 }
 0xac6   : > { %2539 = vmatprep.mubr.msk.bf16.mxu0 %vm2821_vm1, %v2820_v10 }
 0xb98   : > { %v1164_v28 = vpop.f32.mrb[28].mxu0 }
 0xb99   : > { %v1165_v29 = vadd.f32 %v2301_v27, %v1164_v28  ;;  %v2521_v30 = vpop.f32.mrb[29].mxu0 }
 0xb9a   : > { %v1167_v31 = vpop.f32.mrb[30].mxu0 }
 0xb9b   : > { %v2522_v32 = vpop.f32.mrb[31].mxu0  ;;  %v1170_v33 = vadd.f32 %v1165_v29, %v1039_v59 }
 0xb9d   : > { %v1173_v34 = vsel %vm589_vm0, %v1170_v33, 0.0 }
 0xb9e   : > { %1174 = vadd.xlane.f32.xlu0 %v1173_v34 }
 0xc2b   : > { %v1175_v36 = vpop.xlane.xlu0 %1174 }
 0xc2c   : > { %v1176_v37 = vmul.f32 0.03125, %v1175_v36 }
 0xc2e   : > { %v1177_v38 = vsub.f32 %v1170_v33, %v1176_v37 }
 0xc30   : > { %v1178_v39 = vmul.f32 %v1177_v38, %v1177_v38 }
 0xc32   : > { %v1179_v40 = vsel %vm589_vm0, %v1178_v39, 0.0 }
 0xc33   : > { %1180 = vadd.xlane.f32.xlu0 %v1179_v40 }
 0xcc0   : > { %v1181_v47 = vpop.xlane.xlu0 %1180 }
 0xcc1   : > { %v1182_v48 = vmul.f32 0.03125, %v1181_v47  ;;  %v1491_v47 = vpack.c.bf16 %v2315_v46, %v2314_v45 }
 0xcc3   : > { %v1183_v22 = vadd.f32 1e-12, %v1182_v48 }
 0xcc5   : > { %2740 = vrsqrt.f32 %v1183_v22 }
 0xccf   : > { %v2741_v49 = vpop.eup %2740 }
 0xcd0   : > { %v1185_v51 = vmul.f32 %v2741_v49, %v1177_v38 }
 0xcd2   : > { %v1192_v53 = vmul.f32 %v2303_v50, %v1185_v51 }
 0xcd4   : > { %v3170_v54 = vadd.f32 %v2304_v52, %v1192_v53 }
 0xcd6   : > { %v1205_v55 = vpack.c.bf16 %v3170_v54, %v3170_v54 }
 0xcd8   : > { %2528 = vmatmul.mubr.msk.bf16.vlgmr.msra.gmra.mrb[4].mxu1 %vm589_vm0, %v1205_v55 }
 0xcd9   : > { %2533 = vmatprep.mubr.msk.bf16.mxu1 %vm2821_vm1, %v2820_v10 }
 0xdab   : > { %v1253_v57 = vpop.f32.mrb[4].mxu1 }
 0xdac   : > { %v1254_v58 = vadd.f32 %v2310_v56, %v1253_v57  ;;  %v2529_v59 = vpop.f32.mrb[5].mxu1 }
 0xdad   : > { %v1256_v60 = vpop.f32.mrb[6].mxu1 }
 0xdae   : > { %v1264_v61 = vpack.c.bf16 %v1254_v58, %v1254_v58  ;;  %v2530_v62 = vpop.f32.mrb[7].mxu1 }
 0xdb0   : > { %1380 = vrot.lane.b32.xlu1 %v1264_v61, %s2824_s24  ;;  %1266 = vrot.lane.b32.xlu0 %v1264_v61, %s2823_s20  ;;  %s3537_s20 = smov 48   ;;  %s3538_s24 = smov 64  }
 0xdb4   : > { %1378 = vrot.lane.b32.xlu0 %v1264_v61, %s3536_s19 }
 0xe22   : > { %v1267_v63 = vpop.permute.xlu0 %1266  ;;  %v1381_v1 = vpop.permute.xlu1 %1380 }
 0xe23   : > { %v1272_v0 = vsel %vm683_vm2, %v1267_v63, 0  ;;  %v1386_v2 = vsel %vm683_vm2, %v1381_v1, 0  ;;  %v2323_v63 = vld [vmem:[%s3505_s7 + $0x1] ss:$0 sm:$0xff] }
 0xe24   : > { %2532 = vmatpush3.bf16.xpose.msra.mxu1 %v1272_v0 }
 0xe25   : > { %2543 = vmatprep.subr.bf16.mxu1 %v2820_v10 }
 0xe26   : > { %v1379_v3 = vpop.permute.xlu0 %1378 }
 0xe2b   : > { %2534 = vmatmul.mubr.msk.bf16.vlgmr.msra.gmra.mrb[8].mxu1 %vm683_vm2, %v1264_v61 }
 0xe2c   : > { %2544 = vmatpush3.bf16.xpose.msra.mxu1 %v1386_v2  ;;  %2545 = vmatprep.mubr.msk.bf16.mxu1 %vm2821_vm1, %v2820_v10 }
 0xe2d   : > { %2555 = vmatprep.subr.bf16.mxu1 %v2820_v10 }
 0xe33   : > { %2546 = vmatmul.mubr.msk.bf16.vlgmr.msra.gmra.mrb[12].mxu1 %vm683_vm2, %v1379_v3 }
 0xe34   : > { %2557 = vmatprep.mubr.msk.bf16.mxu1 %vm2821_vm1, %v2820_v10  ;;  %2556 = vmatpush3.bf16.msra.mxu1 %v1491_v47 }
 0xe35   : > { %2567 = vmatprep.subr.bf16.mxu1 %v2820_v10 }
 0xefe   : > { %v1308_v4 = vpop.f32.mrb[8].mxu1 }
 0xeff   : > { %v1314_v5 = vmul.f32 0.25, %v1308_v4  ;;  %v2535_v6 = vpop.f32.mrb[9].mxu1 }
 0xf00   : > { %v1311_v7 = vpop.f32.mrb[10].mxu1 }
 0xf01   : > { %v2536_v8 = vpop.f32.mrb[11].mxu1  ;;  %v1315_v9 = vadd.f32 %v3035_v35, %v1314_v5 }
 0xf03   : > { %v1316_v11 = vsel %vm738_vm4, %v1315_v9, -inf }
 0xf04   : > { %1317 = vmax.xlane.f32.xlu0 %v1316_v11 }
 0xf06   : > { %v1422_v12 = vpop.f32.mrb[12].mxu1 }
 0xf07   : > { %v1428_v13 = vmul.f32 0.25, %v1422_v12  ;;  %v2547_v14 = vpop.f32.mrb[13].mxu1 }
 0xf08   : > { %v1425_v15 = vpop.f32.mrb[14].mxu1  ;;  %v2329_v14 = vld [vmem:[%s3508_s10 + $0x28] sm:$0xff] }
 0xf09   : > { %v2548_v16 = vpop.f32.mrb[15].mxu1  ;;  %v1429_v17 = vadd.f32 %v3035_v35, %v1428_v13  ;;  %v2328_v13 = vld [vmem:[%s3508_s10 + $0x20] sm:$0xff] }
 0xf0a   : > { %v1625_v15 = vpack.c.bf16 %v2329_v14, %v2328_v13  ;;  %v2331_v16 = vld [vmem:[%s3508_s10 + $0x38] sm:$0xff] }
 0xf0b   : > { %v1430_v18 = vsel %vm738_vm4, %v1429_v17, -inf }
 0xf0c   : > { %1431 = vmax.xlane.f32.xlu1 %v1430_v18 }
 0xf1d   : > { %1442 = vrot.lane.b32.xlu1 %v1264_v61, %s3537_s20  ;;  %s3456_s20 = scalar_lea.hbm %s3516_s18, %s2386_s29 }
 0xf91   : > { %v1318_v19 = vpop.xlane.xlu0 %1317 }
 0xf92   : > { %v1319_v20 = vsub.f32 %v1315_v9, %v1318_v19 }
 0xf94   : > { %v1320_v21 = vmul.f32 1.442695, %v1319_v20 }
 0xf96   : > { %2742 = vpow2.f32 %v1320_v21 }
 0xf99   : > { %v1432_v23 = vpop.xlane.xlu1 %1431 }
 0xf9a   : > { %v1433_v24 = vsub.f32 %v1429_v17, %v1432_v23  ;;  %v2326_v23 = vld [vmem:[%s3506_s8 + $0x1] ss:$0 sm:$0xff] }
 0xf9c   : > { %v1434_v25 = vmul.f32 1.442695, %v1433_v24 }
 0xf9d   : > { %v1443_v36 = vpop.permute.xlu1 %1442 }
 0xf9e   : > { %2744 = vpow2.f32 %v1434_v25  ;;  %v1448_v38 = vsel %vm756_vm3, %v1443_v36, 0  ;;  %v2327_v25 = vld [vmem:[%s3507_s9 + $0x1] ss:$0 sm:$0xff]  ;;  %v2340_v36 = vld [vmem:[%s3510_s12 + $0x68] sm:$0xff] }
 0xfa0   : > { %v2743_v26 = vpop.eup %2742 }
 0xfa1   : > { %v1322_v27 = vsel %vm738_vm4, %v2743_v26, 0.0 }
 0xfa2   : > { %1323 = vadd.xlane.f32.xlu0 %v1322_v27 }
 0xfa8   : > { %v2745_v28 = vpop.eup %2744 }
 0xfa9   : > { %v1436_v35 = vsel %vm738_vm4, %v2745_v28, 0.0 }
 0xfaa   : > { %1437 = vadd.xlane.f32.xlu0 %v1436_v35  ;;  %v2335_v35 = vld [vmem:[%s3510_s12 + $0x40] sm:$0xff] }
 0xfc0   : > { %1328 = vrot.lane.b32.xlu0 %v1264_v61, %s3538_s24  ;;  %s2204_s24 = scalar_lea.sflag [#allocation3], %s575_s21 }
0x102f   : > { %v1324_v29 = vpop.xlane.xlu0 %1323 }
0x1030   : > { %2746 = vrcp.f32 %v1324_v29  ;;  %v2336_v29 = vld [vmem:[%s3510_s12 + $0x48] sm:$0xff] }
0x1037   : > { %v1438_v30 = vpop.xlane.xlu0 %1437 }
0x1038   : > { %2748 = vrcp.f32 %v1438_v30  ;;  %v1697_v30 = vpack.c.bf16 %v2336_v29, %v2335_v35  ;;  %v2356_v35 = vld [vmem:[%s3514_s16 + $0x40] sm:$0xff]  ;;  %v2357_v29 = vld [vmem:[%s3514_s16 + $0x48] sm:$0xff] }
0x103a   : > { %v2747_v31 = vpop.eup %2746 }
0x103b   : > { %v1326_v32 = vmul.f32 %v2747_v31, %v2743_v26  ;;  %v1329_v33 = vpop.permute.xlu0 %1328  ;;  %v2337_v31 = vld [vmem:[%s3510_s12 + $0x50] sm:$0xff] }
0x103c   : > { %v1334_v34 = vsel %vm756_vm3, %v1329_v33, 0 }
0x103d   : > { %2538 = vmatpush3.bf16.msra.mxu0 %v1334_v34  ;;  %v1327_v37 = vpack.c.bf16 %v1326_v32, %v1326_v32  ;;  %v2338_v32 = vld [vmem:[%s3510_s12 + $0x58] sm:$0xff]  ;;  %v2339_v34 = vld [vmem:[%s3510_s12 + $0x60] sm:$0xff] }
0x103e   : > { %2549 = vmatprep.subr.bf16.mxu0 %v2820_v10  ;;  %v1698_v33 = vpack.c.bf16 %v2338_v32, %v2337_v31  ;;  %v2358_v32 = vld [vmem:[%s3514_s16 + $0x50] sm:$0xff] }
0x1040   : > { %2540 = vmatmul.mubr.msk.bf16.vlgmr.msra.gmra.mrb[32].mxu0 %vm738_vm4, %v1327_v37  ;;  %v1699_v37 = vpack.c.bf16 %v2340_v36, %v2339_v34  ;;  %v2361_v36 = vld [vmem:[%s3514_s16 + $0x60] sm:$0xff] }
0x1041   : > { %2550 = vmatpush3.bf16.msra.mxu0 %v1448_v38  ;;  %2551 = vmatprep.mubr.msk.bf16.mxu0 %vm2821_vm1, %v2820_v10  ;;  %v2341_v38 = vld [vmem:[%s3510_s12 + $0x70] sm:$0xff] }
0x1042   : > { %v2749_v39 = vpop.eup %2748  ;;  %2561 = vmatprep.subr.bf16.mxu0 %v2820_v10 }
0x1043   : > { %v1440_v40 = vmul.f32 %v2749_v39, %v2745_v28  ;;  %v2342_v39 = vld [vmem:[%s3510_s12 + $0x78] sm:$0xff] }
0x1045   : > { %v1441_v41 = vpack.c.bf16 %v1440_v40, %v1440_v40  ;;  %v1700_v40 = vpack.c.bf16 %v2342_v39, %v2341_v38 }
0x1048   : > { %2552 = vmatmul.mubr.msk.bf16.vlgmr.msra.gmra.mrb[36].mxu0 %vm738_vm4, %v1441_v41  ;;  %v2333_v41 = vld [vmem:[%s3509_s11 + $0x1] ss:$0 sm:$0xff] }
0x1049   : > { %2563 = vmatprep.mubr.msk.bf16.mxu0 %vm2821_vm1, %v2820_v10  ;;  %2562 = vmatpush3.bf16.msra.mxu0 %v1377_v44 }
0x104a   : > { %2575 = vmatprep.subr.bf16.mxu0 %v2820_v10 }
0x1113   : > { %v1370_v48 = vpop.f32.mrb[32].mxu0 }
0x1114   : > { %v1376_v22 = vpack.c.bf16 %v1370_v48, %v1370_v48  ;;  %v2541_v49 = vpop.f32.mrb[33].mxu0 }
0x1115   : > { %v1373_v50 = vpop.f32.mrb[34].mxu0 }
0x1116   : > { %v2542_v51 = vpop.f32.mrb[35].mxu0  ;;  %2564 = vmatmul.mubr.msk.bf16.vlgmr.msra.gmra.mrb[40].mxu0 %vm683_vm2, %v1376_v22 }
0x1117   : > { %2583 = vmatprep.mubr.msk.bf16.mxu0 %vm2821_vm1, %v2820_v10  ;;  %2576 = vmatpush3.bf16.msra.mxu0 %v1697_v30  ;;  %v1894_v30 = vpack.c.bf16 %v2357_v29, %v2356_v35 }
0x1118   : > { %2577 = vmatprep.subr.bf16.mxu0 %v2820_v10 }
0x111b   : > { %v1484_v52 = vpop.f32.mrb[36].mxu0  ;;  %2578 = vmatpush3.bf16.msra.mxu0 %v1698_v33  ;;  %v2359_v33 = vld [vmem:[%s3514_s16 + $0x58] sm:$0xff] }
0x111c   : > { %v1490_v53 = vpack.c.bf16 %v1484_v52, %v1484_v52  ;;  %v2553_v55 = vpop.f32.mrb[37].mxu0  ;;  %2579 = vmatprep.subr.bf16.mxu0 %v2820_v10  ;;  %v1895_v34 = vpack.c.bf16 %v2359_v33, %v2358_v32 }
0x111d   : > { %v1487_v56 = vpop.f32.mrb[38].mxu0 }
0x111e   : > { %v2554_v57 = vpop.f32.mrb[39].mxu0  ;;  %2558 = vmatmul.mubr.msk.bf16.vlgmr.msra.gmra.mrb[16].mxu1 %vm683_vm2, %v1490_v53 }
0x111f   : > { %2571 = vmatprep.mubr.msk.bf16.mxu1 %vm2821_vm1, %v2820_v10  ;;  %2568 = vmatpush3.bf16.msra.mxu1 %v1625_v15  ;;  %v2344_v57 = vld [vmem:[%s3511_s13 + $0x1] ss:$0 sm:$0xff] }
0x1120   : > { %2569 = vmatprep.subr.bf16.mxu1 %v2820_v10  ;;  %2580 = vmatpush3.bf16.msra.mxu0 %v1699_v37  ;;  %v2362_v37 = vld [vmem:[%s3514_s16 + $0x68] sm:$0xff] }
0x1121   : > { %2581 = vmatprep.subr.bf16.mxu0 %v2820_v10  ;;  %v1947_v38 = vpack.c.bf16 %v2362_v37, %v2361_v36 }
0x1124   : > { %2582 = vmatpush3.bf16.msra.mxu0 %v1700_v40  ;;  %v2363_v40 = vld [vmem:[%s3514_s16 + $0x70] sm:$0xff] }
0x11e9   : > { %v1572_v58 = vpop.f32.mrb[40].mxu0 }
0x11ea   : > { %v2565_v59 = vpop.f32.mrb[41].mxu0 }
0x11eb   : > { %v1575_v60 = vpop.f32.mrb[42].mxu0 }
0x11ec   : > { %v2566_v61 = vpop.f32.mrb[43].mxu0 }
0x11f1   : > { %v1529_v62 = vpop.f32.mrb[16].mxu1 }
0x11f2   : > { %v1573_v0 = vadd.f32 %v1572_v58, %v1529_v62  ;;  %v2559_v1 = vpop.f32.mrb[17].mxu1 }
0x11f3   : > { %v1532_v2 = vpop.f32.mrb[18].mxu1 }
0x11f4   : > { %v1586_v3 = vadd.f32 %v2323_v63, %v1573_v0  ;;  %v2560_v4 = vpop.f32.mrb[19].mxu1 }
0x11f6   : > { %v1587_v5 = vadd.f32 %v1586_v3, %v3170_v54  ;;  %v2330_v54 = vld [vmem:[%s3508_s10 + $0x30] sm:$0xff] }
0x11f7   : > { %v1626_v17 = vpack.c.bf16 %v2331_v16, %v2330_v54  ;;  %v2348_v16 = vld [vmem:[%s3512_s14 + $0x1] ss:$0 sm:$0xff] }
0x11f8   : > { %v1592_v6 = vsel %vm589_vm0, %v1587_v5, 0.0 }
0x11f9   : > { %1593 = vadd.xlane.f32.xlu1 %v1592_v6  ;;  %2570 = vmatpush3.bf16.msra.mxu1 %v1626_v17  ;;  %v1785_v6 = vld [vmem:[%s3514_s16] sm:$0xff] }
0x11fa   : > { %2587 = vmatprep.subr.bf16.mxu1 %v2820_v10 }
0x1286   : > { %v1594_v7 = vpop.xlane.xlu1 %1593 }
0x1287   : > { %v1595_v8 = vmul.f32 0.03125, %v1594_v7  ;;  %v1786_v7 = vld [vmem:[%s3514_s16 + $0x8] sm:$0xff] }
0x1289   : > { %v1596_v9 = vsub.f32 %v1587_v5, %v1595_v8  ;;  %v1790_v8 = vpack.c.bf16 %v1786_v7, %v1785_v6 }
0x128b   : > { %v1597_v11 = vmul.f32 %v1596_v9, %v1596_v9 }
0x128d   : > { %v1598_v12 = vsel %vm589_vm0, %v1597_v11, 0.0  ;;  %v1788_v11 = vld [vmem:[%s3514_s16 + $0x18] sm:$0xff] }
0x128e   : > { %1599 = vadd.xlane.f32.xlu0 %v1598_v12 }
0x131b   : > { %v1600_v18 = vpop.xlane.xlu0 %1599 }
0x131c   : > { %v1601_v19 = vmul.f32 0.03125, %v1600_v18  ;;  %v2349_v18 = vld [vmem:[%s3513_s15 + $0x1] ss:$0 sm:$0xff] }
0x131e   : > { %v1602_v20 = vadd.f32 1e-12, %v1601_v19 }
0x1320   : > { %2750 = vrsqrt.f32 %v1602_v20  ;;  %v2351_v20 = vld [vmem:[%s3514_s16 + $0x20] sm:$0xff] }
0x132a   : > { %v2751_v21 = vpop.eup %2750 }
0x132b   : > { %v1604_v24 = vmul.f32 %v2751_v21, %v1596_v9  ;;  %v1787_v9 = vld [vmem:[%s3514_s16 + $0x10] sm:$0xff]  ;;  %v2352_v21 = vld [vmem:[%s3514_s16 + $0x28] sm:$0xff] }
0x132c   : > { %v1791_v12 = vpack.c.bf16 %v1788_v11, %v1787_v9 }
0x132d   : > { %v1611_v26 = vmul.f32 %v2326_v23, %v1604_v24  ;;  %v1841_v24 = vpack.c.bf16 %v2352_v21, %v2351_v20 }
0x132f   : > { %v1618_v27 = vadd.f32 %v2327_v25, %v1611_v26  ;;  %v2353_v26 = vld [vmem:[%s3514_s16 + $0x30] sm:$0xff] }
0x1331   : > { %v1624_v28 = vpack.c.bf16 %v1618_v27, %v1618_v27 }
0x1333   : > { %2572 = vmatmul.mubr.msk.bf16.vlgmr.msra.gmra.mrb[20].mxu1 %vm589_vm0, %v1624_v28 }
0x1334   : > { %2591 = vmatprep.mubr.msk.bf16.mxu1 %vm2821_vm1, %v2820_v10  ;;  %2588 = vmatpush3.bf16.msra.mxu1 %v1790_v8  ;;  %v1784_v8 = vld [vmem:[%s3515_s17] sm:$0x1] }
0x1335   : > { %2589 = vmatprep.subr.bf16.mxu1 %v2820_v10 }
0x1338   : > { %2590 = vmatpush3.bf16.msra.mxu1 %v1791_v12 }
0x1339   : > { %2595 = vmatprep.subr.bf16.mxu1 %v2820_v10 }
0x1406   : > { %v1672_v42 = vpop.f32.mrb[20].mxu1 }
0x1407   : > { %v1673_v43 = vadd.f32 %v2333_v41, %v1672_v42  ;;  %v2573_v44 = vpop.f32.mrb[21].mxu1  ;;  %v2364_v41 = vld [vmem:[%s3514_s16 + $0x78] sm:$0xff] }
0x1408   : > { %v1675_v45 = vpop.f32.mrb[22].mxu1  ;;  %v1948_v42 = vpack.c.bf16 %v2364_v41, %v2363_v40  ;;  %v2367_v44 = vld [vmem:[%s3514_s16 + $0x88] sm:$0xff] }
0x1409   : > { %v1678_v46 = vmul.f32 %v1673_v43, %v1673_v43  ;;  %v2574_v47 = vpop.f32.mrb[23].mxu1 }
0x140a   : > { %v2368_v47 = vld [vmem:[%s3514_s16 + $0x90] sm:$0xff] }
0x140b   : > { %v1679_v48 = vmul.f32 %v1678_v46, %v1673_v43 }
0x140d   : > { %v1680_v22 = vmul.f32 0.044715, %v1679_v48  ;;  %v2369_v48 = vld [vmem:[%s3514_s16 + $0x98] sm:$0xff] }
0x140f   : > { %v1681_v49 = vadd.f32 %v1680_v22, %v1673_v43  ;;  %v2000_v22 = vpack.c.bf16 %v2369_v48, %v2368_v47 }
0x1411   : > { %v1682_v50 = vmul.f32 0.7978846, %v1681_v49  ;;  %v2371_v49 = vld [vmem:[%s3514_s16 + $0xa0] sm:$0xff] }
0x1413   : > { %2752 = vtanh.f32 %v1682_v50  ;;  %v2372_v50 = vld [vmem:[%s3514_s16 + $0xa8] sm:$0xff] }
0x141d   : > { %v2753_v51 = vpop.eup %2752 }
0x141e   : > { %v1684_v52 = vadd.f32 1.0, %v2753_v51  ;;  %v2051_v51 = vpack.c.bf16 %v2372_v50, %v2371_v49 }
0x1420   : > { %v1685_v53 = vmul.f32 0.5, %v1684_v52 }
0x1422   : > { %v1686_v55 = vmul.f32 %v1685_v53, %v1673_v43  ;;  %v2366_v43 = vld [vmem:[%s3514_s16 + $0x80] sm:$0xff]  ;;  %v2373_v53 = vld [vmem:[%s3514_s16 + $0xb0] sm:$0xff] }
0x1423   : > { %v1999_v45 = vpack.c.bf16 %v2367_v44, %v2366_v43 }
0x1424   : > { %v1696_v56 = vpack.c.bf16 %v1686_v55, %v1686_v55  ;;  %v2374_v55 = vld [vmem:[%s3514_s16 + $0xb8] sm:$0xff] }
0x1426   : > { %2584 = vmatmul.mubr.msk.bf16.vlgmr.msra.gmra.mrb[44].mxu0 %vm1126_vm5, %v1696_v56  ;;  %v2052_v56 = vpack.c.bf16 %v2374_v55, %v2373_v53 }
0x14f9   : > { %v1746_v58 = vpop.f32.mrb[44].mxu0 }
0x14fa   : > { %v1747_v59 = vadd.f32 %v2344_v57, %v1746_v58  ;;  %v2585_v60 = vpop.f32.mrb[45].mxu0  ;;  %v2376_v57 = vld [vmem:[%s3514_s16 + $0xc0] sm:$0xff]  ;;  %v2377_v58 = vld [vmem:[%s3514_s16 + $0xc8] sm:$0xff] }
0x14fb   : > { %v1749_v61 = vpop.f32.mrb[46].mxu0 }
0x14fc   : > { %v2586_v62 = vpop.f32.mrb[47].mxu0  ;;  %v1752_v63 = vadd.f32 %v1747_v59, %v1618_v27  ;;  %v2354_v27 = vld [vmem:[%s3514_s16 + $0x38] sm:$0xff]  ;;  %v2103_v59 = vpack.c.bf16 %v2377_v58, %v2376_v57  ;;  %v2378_v61 = vld [vmem:[%s3514_s16 + $0xd0] sm:$0xff] }
0x14fd   : > { %v1842_v28 = vpack.c.bf16 %v2354_v27, %v2353_v26  ;;  %v2379_v62 = vld [vmem:[%s3514_s16 + $0xd8] sm:$0xff] }
0x14fe   : > { %v1757_v0 = vsel %vm589_vm0, %v1752_v63, 0.0 }
0x14ff   : > { %1758 = vadd.xlane.f32.xlu0 %v1757_v0  ;;  %v2381_v0 = vld [vmem:[%s3514_s16 + $0xe0] sm:$0xff] }
0x158c   : > { %v1759_v1 = vpop.xlane.xlu0 %1758 }
0x158d   : > { %v1760_v2 = vmul.f32 0.03125, %v1759_v1  ;;  %v2382_v1 = vld [vmem:[%s3514_s16 + $0xe8] sm:$0xff] }
0x158f   : > { %v1761_v3 = vsub.f32 %v1752_v63, %v1760_v2  ;;  %v2104_v63 = vpack.c.bf16 %v2379_v62, %v2378_v61  ;;  %v2155_v2 = vpack.c.bf16 %v2382_v1, %v2381_v0 }
0x1591   : > { %v1762_v4 = vmul.f32 %v1761_v3, %v1761_v3 }
0x1593   : > { %v1763_v5 = vsel %vm589_vm0, %v1762_v4, 0.0  ;;  %v2383_v4 = vld [vmem:[%s3514_s16 + $0xf0] sm:$0xff] }
0x1594   : > { %1764 = vadd.xlane.f32.xlu1 %v1763_v5  ;;  %v2384_v5 = vld [vmem:[%s3514_s16 + $0xf8] sm:$0xff] }
0x1595   : > { %v2156_v6 = vpack.c.bf16 %v2384_v5, %v2383_v4 }
0x1621   : > { %v1765_v13 = vpop.xlane.xlu1 %1764 }
0x1622   : > { %v1766_v14 = vmul.f32 0.03125, %v1765_v13 }
0x1624   : > { %v1767_v15 = vadd.f32 1e-12, %v1766_v14 }
0x1626   : > { %2754 = vrsqrt.f32 %v1767_v15 }
0x1630   : > { %v2755_v54 = vpop.eup %2754 }
0x1631   : > { %v1769_v17 = vmul.f32 %v2755_v54, %v1761_v3 }
0x1633   : > { %v1776_v19 = vmul.f32 %v2348_v16, %v1769_v17 }
0x1635   : > { %v1783_v23 = vadd.f32 %v2349_v18, %v1776_v19 }
0x1637   : > { %v3322_v25 = vpack.c.bf16 %v1783_v23, %v1783_v23 }
0x1639   : > { %2592 = vmatmul.mubr.msk.bf16.vlgmr.msra.gmra.mrb[24].mxu1 %vm589_vm0, %v3322_v25  ;;  %v3343_v31 = vshrl.u32 %v3322_v25, 16  ;;  %v1897_v39 = vrot.slane %v3322_v25, 1  ;;  %v2001_v52 = vrot.slane %v3322_v25, 2  ;;  %v2105_v3 = vrot.slane %v3322_v25, 3 }
0x163a   : > { %2596 = vmatpush3.bf16.msra.mxu1 %v1841_v24  ;;  %2599 = vmatprep.mubr.msk.bf16.mxu1 %vm2821_vm1, %v2820_v10 }
0x163b   : > { %2597 = vmatprep.subr.bf16.mxu1 %v2820_v10  ;;  %v1949_v46 = vrot.slane %v3343_v31, 1  ;;  %v2053_v60 = vrot.slane %v3343_v31, 2  ;;  %v2157_v7 = vrot.slane %v3343_v31, 3 }
0x163e   : > { %2598 = vmatpush3.bf16.msra.mxu1 %v1842_v28 }
0x163f   : > { %2603 = vmatprep.subr.bf16.mxu1 %v2820_v10 }
0x1645   : > { %2600 = vmatmul.mubr.msk.bf16.vlgmr.msra.gmra.mrb[24].mxu1 %vm589_vm0, %v3343_v31 }
0x1646   : > { %2604 = vmatpush3.bf16.msra.mxu1 %v1894_v30  ;;  %2607 = vmatprep.mubr.msk.bf16.mxu1 %vm2821_vm1, %v2820_v10 }
0x1647   : > { %2605 = vmatprep.subr.bf16.mxu1 %v2820_v10 }
0x164a   : > { %2606 = vmatpush3.bf16.msra.mxu1 %v1895_v34 }
0x164b   : > { %2611 = vmatprep.subr.bf16.mxu1 %v2820_v10 }
0x1651   : > { %2608 = vmatmul.mubr.msk.bf16.vlgmr.msra.gmra.mrb[24].mxu1 %vm589_vm0, %v1897_v39 }
0x1652   : > { %2612 = vmatpush3.bf16.msra.mxu1 %v1947_v38  ;;  %2615 = vmatprep.mubr.msk.bf16.mxu1 %vm2821_vm1, %v2820_v10 }
0x1653   : > { %2613 = vmatprep.subr.bf16.mxu1 %v2820_v10 }
0x1656   : > { %2614 = vmatpush3.bf16.msra.mxu1 %v1948_v42 }
0x1657   : > { %2619 = vmatprep.subr.bf16.mxu1 %v2820_v10 }
0x165d   : > { %2616 = vmatmul.mubr.msk.bf16.vlgmr.msra.gmra.mrb[24].mxu1 %vm589_vm0, %v1949_v46 }
0x165e   : > { %2620 = vmatpush3.bf16.msra.mxu1 %v1999_v45  ;;  %2623 = vmatprep.mubr.msk.bf16.mxu1 %vm2821_vm1, %v2820_v10 }
0x165f   : > { %2621 = vmatprep.subr.bf16.mxu1 %v2820_v10 }
0x1662   : > { %2622 = vmatpush3.bf16.msra.mxu1 %v2000_v22 }
0x1663   : > { %2627 = vmatprep.subr.bf16.mxu1 %v2820_v10 }
0x1669   : > { %2624 = vmatmul.mubr.msk.bf16.vlgmr.msra.gmra.mrb[24].mxu1 %vm589_vm0, %v2001_v52 }
0x166a   : > { %2628 = vmatpush3.bf16.msra.mxu1 %v2051_v51  ;;  %2631 = vmatprep.mubr.msk.bf16.mxu1 %vm2821_vm1, %v2820_v10 }
0x166b   : > { %2629 = vmatprep.subr.bf16.mxu1 %v2820_v10 }
0x166e   : > { %2630 = vmatpush3.bf16.msra.mxu1 %v2052_v56 }
0x166f   : > { %2635 = vmatprep.subr.bf16.mxu1 %v2820_v10 }
0x1675   : > { %2632 = vmatmul.mubr.msk.bf16.vlgmr.msra.gmra.mrb[24].mxu1 %vm589_vm0, %v2053_v60 }
0x1676   : > { %2636 = vmatpush3.bf16.msra.mxu1 %v2103_v59  ;;  %2639 = vmatprep.mubr.msk.bf16.mxu1 %vm2821_vm1, %v2820_v10 }
0x1677   : > { %2637 = vmatprep.subr.bf16.mxu1 %v2820_v10 }
0x167a   : > { %2638 = vmatpush3.bf16.msra.mxu1 %v2104_v63 }
0x167b   : > { %2643 = vmatprep.subr.bf16.mxu1 %v2820_v10 }
0x1681   : > { %2640 = vmatmul.mubr.msk.bf16.vlgmr.msra.gmra.mrb[24].mxu1 %vm589_vm0, %v2105_v3 }
0x1682   : > { %2644 = vmatpush3.bf16.msra.mxu1 %v2155_v2  ;;  %2647 = vmatprep.mubr.msk.bf16.mxu1 %vm2821_vm1, %v2820_v10 }
0x1683   : > { %2645 = vmatprep.subr.bf16.mxu1 %v2820_v10 }
0x1686   : > { %2646 = vmatpush3.bf16.msra.mxu1 %v2156_v6 }
0x168d   : > { %2648 = vmatmul.mubr.msk.bf16.vlgmr.msra.gmra.mrb[24].mxu1 %vm589_vm0, %v2157_v7 }
0x1760   : > { %v2195_v9 = vpop.f32.mrb[24].mxu1 }
0x1761   : > { %v2651_v11 = vadd.f32 %v2195_v9, %v1784_v8  ;;  %v2649_v12 = vpop.f32.mrb[25].mxu1 }
0x1762   : > { %v2198_v10 = vpop.f32.mrb[26].mxu1 }
0x1763   : > { %2202 = vst [vmem:[%s576_s1] sm:$0x1] %v2651_v11  ;;  %v2650_v13 = vpop.f32.mrb[27].mxu1 }
0x1764   : > { %2769 = shalt.err (!%p2766_p3)
}
0x1765   : > { %s2770_s21 = scalar_lea.hbm %s3456_s20, 16  ;;  %s2774_s19 = scalar_lea.hbm %s3516_s18, 32 }
0x1766   : > { %p2771_p4 = scmp.ne.s32.totalorder %s3456_s20, %s2770_s21  ;;  %p2775_p9 = scmp.lt.u32.totalorder %s3456_s20, %s3516_s18 }
0x1767   : > { %p2776_p10 = scmp.lt.u32.totalorder %s2774_s19, %s2770_s21  ;;  %p2778_p12 = scmp.lt.u32.totalorder %s2770_s21, %s3456_s20 }
0x1768   : > { %p2772_p7 = pnand %p2771_p4, %p2961_p5 }
0x1769   : > { %p2777_p11 = por %p2776_p10, %p2775_p9 }
0x176a   : > { %p2773_p8 = pneg %p2772_p7 }
0x176b   : > { %p2779_p13 = por %p2778_p12, %p2777_p11 }
0x176d   : > { %p2780_p0 = pnand %p2779_p13, %p2773_p8 }
0x176f   : > { %2783 = shalt.err (!%p2780_p0)
}
0x1770   : > { %2680 = dma.vmem_to_hbm [thread:$0]  (%p2961_p5), %s3458_s22, 16, %s3456_s20, %s2204_s24  }
0x1771 PF: > { %p2686_p1 = scmp.ge.s32.totalorder %s2818_s30, 2  ;;  %s2228_s23 = sand.u32 1, %s2806_s27  }
0x1772   : > { %s2229_s29 = scalar_lea.sflag [#allocation3], %s2228_s23 }
0x1773   : > { %p2683_p2 = pnand %p2686_p1, %p2965_p6 }
0x1775   : > { %2801 = dma.done.wait (!%p2683_p2), %s2229_s29, 16  }
0x1776   : > { %2803 = vsyncadd (!%p2683_p2), %s2229_s29, 4294967280  ;;  %s3540_s30 = sld [smem:[#allocation6_spill]]  ;;  %s3541_s21 = sld [smem:[#allocation5_spill]] }
0x1777   : > { %s3542_s29 = sld [smem:[#allocation7_spill]]  ;;  %s3543_s27 = smov %s2810_s28 }
0x177c   : > { %p28_p3 = scmp.ge.s32.totalorder %s3540_s30, 4   ;;  %s3544_s28 = smov %s3541_s21 }
0x177e   :  { %30 = sbr.rel (!%p28_p3) target bundleno = 7 (0x7), region = 149 }
0x1785   :  { %2233 = vsyncpa [#allocation3], 1 }
0x1786   :  { %2235 = vsyncpa [#allocation3 + $0x1], 1 }

</bundles_post_ra>
